<compile_context>
chip_gen: v5e
topology: v5e:2x2
jax: 0.10.0
libtpu: 0.0.40
codegen_flags: <defaults>
</compile_context>

<pallas_src>
import jax
import jax.numpy as jnp
from jax.experimental import pallas as pl
from jax.experimental.pallas import tpu as pltpu


# ----------------------------------------------------------------------------
# Host-side parameter packing (runs once, outside jit, on concrete arrays).
# ----------------------------------------------------------------------------
def pack_tcn_params(params, dilations, next_steps):
    """Pack every weight/bias into ONE f32 (rows, CW) buffer + static meta.

    * Conv weights are pre-reshaped to im2col form (K*Cin, F) so each dilated
      conv in the kernel is a single MXU matmul.
    * Each sub-matrix is padded to an 8-row multiple so every in-kernel static
      slice starts on a sublane-aligned offset.
    * For blocks whose channel count changes (1x1 residual projection) and odd
      K, the projection is folded into that block's first conv weight as F
      extra output columns (non-zero only on the centre-tap rows).
    """
    blocks = params["blocks"]
    assert len(dilations) == len(blocks)
    K = int(blocks[0]["w1"].shape[0])
    F = int(blocks[0]["w1"].shape[-1])
    out_dim = int(params["head_w"].shape[-1])
    mid = (K - 1) // 2
    can_fold = (K % 2 == 1)          # centre tap == unshifted input only for odd K

    any_fold = can_fold and any("wr" in b for b in blocks)
    CW = max(F, out_dim, 2 * F if any_fold else 0)

    chunks = []
    row_ptr = [0]

    def add(mat):
        mat = jnp.asarray(mat, jnp.float32)
        r, c = mat.shape
        mat = jnp.pad(mat, ((0, (-r) % 8), (0, CW - c)))
        start = row_ptr[0]
        chunks.append(mat)
        row_ptr[0] += int(mat.shape[0])
        return start

    block_meta = []
    cin = int(blocks[0]["w1"].shape[1])
    for blk, d in zip(blocks, dilations):
        d = int(d)
        has_proj = "wr" in blk
        fold = has_proj and can_fold
        w1 = jnp.asarray(blk["w1"], jnp.float32).reshape(K * cin, F)
        if fold:
            wr = jnp.asarray(blk["wr"], jnp.float32).reshape(cin, F)
            proj_cols = jnp.zeros((K * cin, F), jnp.float32)
            proj_cols = proj_cols.at[mid * cin:(mid + 1) * cin, :].set(wr)
            w1 = jnp.concatenate([w1, proj_cols], axis=-1)        # (K*cin, 2F)
        bm = {
            "dilation": d, "cin": cin, "has_proj": has_proj, "fold": fold,
            "w1_row": add(w1),
            "b1_row": add(jnp.asarray(blk["b1"], jnp.float32).reshape(1, F)),
            "w2_row": add(jnp.asarray(blk["w2"], jnp.float32).reshape(K * F, F)),
            "b2_row": add(jnp.asarray(blk["b2"], jnp.float32).reshape(1, F)),
            "br_row": -1, "wr_row": -1,
        }
        if has_proj:
            bm["br_row"] = add(jnp.asarray(blk["br"], jnp.float32).reshape(1, F))
            if not fold:
                bm["wr_row"] = add(jnp.asarray(blk["wr"], jnp.float32).reshape(cin, F))
        block_meta.append(bm)
        cin = F

    head_row = add(jnp.asarray(params["head_w"], jnp.float32).reshape(F, out_dim))
    headb_row = add(jnp.asarray(params["head_b"], jnp.float32).reshape(1, out_dim))
    wbuf = jnp.concatenate(chunks, axis=0)

    pads_l = [(d * (K - 1)) // 2 for d in dilations]
    pads_r = [d * (K - 1) - p for d, p in zip(dilations, pads_l)]
    meta = {
        "K": K, "F": F, "out_dim": out_dim, "CW": CW,
        "next_steps": int(next_steps),
        "max_pl": max(pads_l), "max_pr": max(pads_r),
        "blocks": tuple(block_meta),
        "head_row": head_row, "headb_row": headb_row,
        "wbuf_rows": int(wbuf.shape[0]),
    }
    return wbuf, meta


# ----------------------------------------------------------------------------
# Fused kernel.
# ----------------------------------------------------------------------------
def _build_fused_kernel(meta, B, T, D):
    K = meta["K"]; F = meta["F"]; out_dim = meta["out_dim"]
    next_steps = meta["next_steps"]
    center = meta["max_pl"]; max_pr = meta["max_pr"]
    c_max = max(D, F)

    def kernel(x_ref, w_ref, o_ref, hp_ref):
        # Zero ONLY the halo rows; they act as the 'same' zero padding for
        # every layer (centre rows are always rewritten before being read).
        if center > 0:
            hp_ref[:, :center, :] = jnp.zeros((B, center, c_max), jnp.float32)
        if max_pr > 0:
            hp_ref[:, center + T:, :] = jnp.zeros((B, max_pr, c_max), jnp.float32)

        def wslab(row, nrows, ncols):           # sublane-aligned static slice
            return w_ref[row:row + nrows, :ncols]

        def brow(row, ncols):                   # (1, ncols) bias row
            return w_ref[row:row + 1, :ncols]

        def conv_im2col(h2d, c_in, d):
            """Write h into the halo centre, gather the K dilated windows
            straight from the ref and im2col them to (B*T, K*c_in)."""
            hp_ref[:, center:center + T, :c_in] = h2d.reshape(B, T, c_in)
            pad_l = (d * (K - 1)) // 2
            parts = []
            for k in range(K):                  # static unroll over taps
                off = center - pad_l + k * d
                parts.append(hp_ref[:, off:off + T, :c_in])
            return jnp.concatenate(parts, axis=-1).reshape(B * T, K * c_in)

        h = x_ref[...].reshape(B * T, D).astype(jnp.float32)
        cin = D
        for bm in meta["blocks"]:
            d = bm["dilation"]
            slab = conv_im2col(h, cin, d)
            if bm["fold"]:
                # conv1 and the 1x1 residual projection share one matmul.
                y2 = jnp.dot(slab, wslab(bm["w1_row"], K * cin, 2 * F),
                             preferred_element_type=jnp.float32)
                conv1 = y2[:, :F]
                res = y2[:, F:2 * F] + brow(bm["br_row"], F)
            else:
                conv1 = jnp.dot(slab, wslab(bm["w1_row"], K * cin, F),
                                preferred_element_type=jnp.float32)
                if bm["has_proj"]:
                    res = jnp.dot(h, wslab(bm["wr_row"], cin, F),
                                  preferred_element_type=jnp.float32)
                    res = res + brow(bm["br_row"], F)
                else:
                    res = h
            y = jnp.maximum(conv1 + brow(bm["b1_row"], F), 0.0)

            slab2 = conv_im2col(y, F, d)
            y = jnp.dot(slab2, wslab(bm["w2_row"], K * F, F),
                        preferred_element_type=jnp.float32)
            y = jnp.maximum(y + brow(bm["b2_row"], F), 0.0)

            h = jnp.maximum(y + res, 0.0)
            cin = F

        # Keep last `next_steps` timesteps, then the 1x1 head conv
        # ('linear' activation == identity).
        tail = h.reshape(B, T, F)[:, T - next_steps:, :].reshape(B * next_steps, F)
        out = jnp.dot(tail, wslab(meta["head_row"], F, out_dim),
                      preferred_element_type=jnp.float32)
        out = out + brow(meta["headb_row"], out_dim)
        o_ref[...] = out.reshape(B, next_steps, out_dim).astype(o_ref.dtype)

    return kernel


def make_tcn_pred_forward(meta, B, T, D):
    """Returns forward(x, wbuf) -> (B, next_steps, out_dim)."""
    K = meta["K"]; F = meta["F"]; out_dim = meta["out_dim"]
    next_steps = meta["next_steps"]
    c_max = max(D, F)
    t_halo = meta["max_pl"] + T + meta["max_pr"]

    flops = 0
    for bm in meta["blocks"]:
        cin = bm["cin"]
        w1_cols = 2 * F if bm["fold"] else F
        flops += 2 * B * T * (K * cin) * w1_cols
        flops += 2 * B * T * (K * F) * F
        if bm["has_proj"] and not bm["fold"]:
            flops += 2 * B * T * cin * F
    flops += 2 * B * next_steps * F * out_dim
    bytes_accessed = 4 * (B * T * D + meta["wbuf_rows"] * meta["CW"]
                          + B * next_steps * out_dim)

    kernel = _build_fused_kernel(meta, B, T, D)

    def forward(x, wbuf):
        return pl.pallas_call(
            kernel,
            out_shape=jax.ShapeDtypeStruct((B, next_steps, out_dim), jnp.float32),
            scratch_shapes=[pltpu.VMEM((B, t_halo, c_max), jnp.float32)],
            cost_estimate=pl.CostEstimate(flops=int(flops), transcendentals=0,
                                          bytes_accessed=int(bytes_accessed)),
        )(x, wbuf)

    return forward


# ----------------------------------------------------------------------------
# Parameter init (mirrors the module's layer shapes) and pure-JAX reference.
# ----------------------------------------------------------------------------
def init_params(key, input_dim, nb_filters, kernel_size, nb_stacks, dilations,
                output_dim):
    params = {"blocks": []}
    cin = input_dim
    k = kernel_size
    for _ in range(nb_stacks):
        for _d in dilations:
            key, k1, k2, k3, k4, k5, k6 = jax.random.split(key, 7)
            blk = {
                "w1": jax.random.normal(k1, (k, cin, nb_filters), jnp.float32)
                      * (1.0 / (k * cin) ** 0.5),
                "b1": jax.random.normal(k2, (nb_filters,), jnp.float32) * 0.1,
                "w2": jax.random.normal(k3, (k, nb_filters, nb_filters), jnp.float32)
                      * (1.0 / (k * nb_filters) ** 0.5),
                "b2": jax.random.normal(k4, (nb_filters,), jnp.float32) * 0.1,
            }
            if cin != nb_filters:
                blk["wr"] = jax.random.normal(k5, (1, cin, nb_filters), jnp.float32) \
                            * (1.0 / cin ** 0.5)
                blk["br"] = jax.random.normal(k6, (nb_filters,), jnp.float32) * 0.1
            params["blocks"].append(blk)
            cin = nb_filters
    key, kh, khb = jax.random.split(key, 3)
    # Final torch.nn.Conv1d(nb_filters, output_dim, kernel_size=1, padding='same')
    params["head_w"] = jax.random.normal(kh, (1, nb_filters, output_dim), jnp.float32) \
                       * (1.0 / nb_filters ** 0.5)
    params["head_b"] = jax.random.normal(khb, (output_dim,), jnp.float32) * 0.1
    return params


def _ref_forward(params, x, dilations, *, next_steps=1):
    """Pure-JAX (XLA) reference of the same forward pass, for validation."""
    K = params["blocks"][0]["w1"].shape[0]

    def conv(z, w, b, d):
        T = z.shape[1]
        total = d * (K - 1)
        p_l, p_r = total // 2, total - total // 2
        zp = jnp.pad(z, ((0, 0), (p_l, p_r), (0, 0)))
        acc = None
        for k in range(K):
            part = jnp.einsum("btc,cf->btf", zp[:, k * d:k * d + T, :], w[k])
            acc = part if acc is None else acc + part
        return jax.nn.relu(acc + b)

    h = x
    for blk, d in zip(params["blocks"], dilations):
        d = int(d)
        if "wr" in blk:
            res = jnp.einsum("btc,cf->btf", h, blk["wr"][0]) + blk["br"]
        else:
            res = h
        y = conv(h, blk["w1"], blk["b1"], d)
        y = conv(y, blk["w2"], blk["b2"], d)
        h = jax.nn.relu(y + res)
    h = h[:, -next_steps:, :]
    return jnp.einsum("btc,cf->btf", h, params["head_w"][0]) + params["head_b"]


if __name__ == "__main__":
    B, T, D = 2, 16, 3
    nb_filters = 20
    dilations = (1, 2, 4, 8)
    kernel_size = 3          # first element of the module's kernel_size=(3, 9)
    nb_stacks = 1
    output_dim = 3
    next_steps = 1

    key = jax.random.PRNGKey(0)
    kp, kx = jax.random.split(key)
    params = init_params(kp, D, nb_filters, kernel_size, nb_stacks, dilations,
                         output_dim)
    x = jax.random.normal(kx, (B, T, D), jnp.float32)

    # Dilations are STATIC Python ints (never traced) -> no ConcretizationTypeError.
    block_dilations = tuple(int(d) for d in dilations) * nb_stacks

    # Pack weights once on the host (2 kernel inputs total: x + weight slab).
    wbuf, meta = pack_tcn_params(params, block_dilations, next_steps)

    fwd = jax.jit(make_tcn_pred_forward(meta, B, T, D))
    out = jax.block_until_ready(fwd(x, wbuf))

    assert out.shape == (B, next_steps, output_dim), out.shape
    assert bool(jnp.all(jnp.isfinite(out)))

    ref = jax.block_until_ready(
        _ref_forward(params, x, block_dilations, next_steps=next_steps))
    max_err = float(jnp.max(jnp.abs(out - ref)))
    assert max_err < 1e-4, f"mismatch vs reference: max abs err {max_err}"

    print("KERNEL_OK")
</pallas_src>

<mosaic_0001>
module attributes {stable_mosaic.version = 11 : i64} {
  func.func @kernel(%arg0: memref<2x16x3xf32, #tpu.memory_space<vmem>>, %arg1: memref<568x40xf32, #tpu.memory_space<vmem>>, %arg2: memref<2x1x3xf32, #tpu.memory_space<vmem>>, %arg3: memref<2x32x20xf32, #tpu.memory_space<vmem>>) attributes {dimension_semantics = [], scalar_prefetch = 0 : i64, scratch_operands = 1 : i64, tpu.core_type = #tpu.core_type<tc>} {
    %cst = arith.constant 0.000000e+00 : f32
    %0 = vector.broadcast %cst : f32 to vector<2x8x20xf32>
    %c0 = arith.constant 0 : index
    %c0_0 = arith.constant 0 : index
    %c0_1 = arith.constant 0 : index
    %1 = vector.load %arg3[%c0, %c0_0, %c0_1] : memref<2x32x20xf32, #tpu.memory_space<vmem>>, vector<2x8x20xf32>
    tpu.vector_store %arg3[%c0, %c0_0, %c0_1], %0 {strides = array<i32>} : memref<2x32x20xf32, #tpu.memory_space<vmem>>, vector<2x8x20xf32>,
    %cst_2 = arith.constant 0.000000e+00 : f32
    %2 = vector.broadcast %cst_2 : f32 to vector<2x8x20xf32>
    %c0_3 = arith.constant 0 : index
    %c24 = arith.constant 24 : index
    %c0_4 = arith.constant 0 : index
    %3 = vector.load %arg3[%c0_3, %c24, %c0_4] : memref<2x32x20xf32, #tpu.memory_space<vmem>>, vector<2x8x20xf32>
    tpu.vector_store %arg3[%c0_3, %c24, %c0_4], %2 {strides = array<i32>} : memref<2x32x20xf32, #tpu.memory_space<vmem>>, vector<2x8x20xf32>,
    %c0_5 = arith.constant 0 : index
    %c0_6 = arith.constant 0 : index
    %c0_7 = arith.constant 0 : index
    %4 = vector.load %arg0[%c0_5, %c0_6, %c0_7] : memref<2x16x3xf32, #tpu.memory_space<vmem>>, vector<2x16x3xf32>
    %5 = vector.shape_cast %4 : vector<2x16x3xf32> to vector<32x3xf32>
    %6 = vector.shape_cast %5 : vector<32x3xf32> to vector<2x16x3xf32>
    %c0_8 = arith.constant 0 : index
    %c8 = arith.constant 8 : index
    %c0_9 = arith.constant 0 : index
    %7 = vector.load %arg3[%c0_8, %c8, %c0_9] : memref<2x32x20xf32, #tpu.memory_space<vmem>>, vector<2x16x3xf32>
    tpu.vector_store %arg3[%c0_8, %c8, %c0_9], %6 {strides = array<i32>} : memref<2x32x20xf32, #tpu.memory_space<vmem>>, vector<2x16x3xf32>,
    %c0_10 = arith.constant 0 : index
    %c7 = arith.constant 7 : index
    %c0_11 = arith.constant 0 : index
    %8 = vector.load %arg3[%c0_10, %c7, %c0_11] : memref<2x32x20xf32, #tpu.memory_space<vmem>>, vector<2x16x3xf32>
    %c0_12 = arith.constant 0 : index
    %c8_13 = arith.constant 8 : index
    %c0_14 = arith.constant 0 : index
    %9 = vector.load %arg3[%c0_12, %c8_13, %c0_14] : memref<2x32x20xf32, #tpu.memory_space<vmem>>, vector<2x16x3xf32>
    %c0_15 = arith.constant 0 : index
    %c9 = arith.constant 9 : index
    %c0_16 = arith.constant 0 : index
    %10 = vector.load %arg3[%c0_15, %c9, %c0_16] : memref<2x32x20xf32, #tpu.memory_space<vmem>>, vector<2x16x3xf32>
    %11 = tpu.concatenate %8, %9, %10 in 2 : vector<2x16x3xf32>, vector<2x16x3xf32>, vector<2x16x3xf32> -> vector<2x16x9xf32>
    %12 = vector.shape_cast %11 : vector<2x16x9xf32> to vector<32x9xf32>
    %c0_17 = arith.constant 0 : index
    %c0_18 = arith.constant 0 : index
    %13 = vector.load %arg1[%c0_17, %c0_18] : memref<568x40xf32, #tpu.memory_space<vmem>>, vector<9x40xf32>
    %cst_19 = arith.constant dense<0.000000e+00> : vector<32x40xf32>
    %14 = tpu.matmul %12, %13, %cst_19 {dimension_numbers = #tpu.dot_dimension_numbers<[1], [0], [0], [1], [0, 0, 1, 1], [], []>} : vector<32x9xf32>, vector<9x40xf32>, vector<32x40xf32> -> vector<32x40xf32>
    %15 = vector.extract_strided_slice %14 {offsets = [0, 0], sizes = [32, 20], strides = [1, 1]} : vector<32x40xf32> to vector<32x20xf32>
    %16 = vector.extract_strided_slice %14 {offsets = [0, 20], sizes = [32, 20], strides = [1, 1]} : vector<32x40xf32> to vector<32x20xf32>
    %c96 = arith.constant 96 : index
    %c0_20 = arith.constant 0 : index
    %17 = vector.load %arg1[%c96, %c0_20] : memref<568x40xf32, #tpu.memory_space<vmem>>, vector<1x20xf32>
    %18 = vector.broadcast %17 : vector<1x20xf32> to vector<32x20xf32>
    %19 = arith.addf %16, %18 : vector<32x20xf32>
    %c16 = arith.constant 16 : index
    %c0_21 = arith.constant 0 : index
    %20 = vector.load %arg1[%c16, %c0_21] : memref<568x40xf32, #tpu.memory_space<vmem>>, vector<1x20xf32>
    %21 = vector.broadcast %20 : vector<1x20xf32> to vector<32x20xf32>
    %22 = arith.addf %15, %21 : vector<32x20xf32>
    %cst_22 = arith.constant 0.000000e+00 : f32
    %23 = vector.broadcast %cst_22 : f32 to vector<32x20xf32>
    %24 = arith.maximumf %22, %23 : vector<32x20xf32>
    %25 = vector.shape_cast %24 : vector<32x20xf32> to vector<2x16x20xf32>
    %c0_23 = arith.constant 0 : index
    %c8_24 = arith.constant 8 : index
    %c0_25 = arith.constant 0 : index
    %26 = vector.load %arg3[%c0_23, %c8_24, %c0_25] : memref<2x32x20xf32, #tpu.memory_space<vmem>>, vector<2x16x20xf32>
    tpu.vector_store %arg3[%c0_23, %c8_24, %c0_25], %25 {strides = array<i32>} : memref<2x32x20xf32, #tpu.memory_space<vmem>>, vector<2x16x20xf32>,
    %c0_26 = arith.constant 0 : index
    %c7_27 = arith.constant 7 : index
    %c0_28 = arith.constant 0 : index
    %27 = vector.load %arg3[%c0_26, %c7_27, %c0_28] : memref<2x32x20xf32, #tpu.memory_space<vmem>>, vector<2x16x20xf32>
    %c0_29 = arith.constant 0 : index
    %c8_30 = arith.constant 8 : index
    %c0_31 = arith.constant 0 : index
    %28 = vector.load %arg3[%c0_29, %c8_30, %c0_31] : memref<2x32x20xf32, #tpu.memory_space<vmem>>, vector<2x16x20xf32>
    %c0_32 = arith.constant 0 : index
    %c9_33 = arith.constant 9 : index
    %c0_34 = arith.constant 0 : index
    %29 = vector.load %arg3[%c0_32, %c9_33, %c0_34] : memref<2x32x20xf32, #tpu.memory_space<vmem>>, vector<2x16x20xf32>
    %30 = tpu.concatenate %27, %28, %29 in 2 : vector<2x16x20xf32>, vector<2x16x20xf32>, vector<2x16x20xf32> -> vector<2x16x60xf32>
    %31 = vector.shape_cast %30 : vector<2x16x60xf32> to vector<32x60xf32>
    %c24_35 = arith.constant 24 : index
    %c0_36 = arith.constant 0 : index
    %32 = vector.load %arg1[%c24_35, %c0_36] : memref<568x40xf32, #tpu.memory_space<vmem>>, vector<60x20xf32>
    %cst_37 = arith.constant dense<0.000000e+00> : vector<32x20xf32>
    %33 = tpu.matmul %31, %32, %cst_37 {dimension_numbers = #tpu.dot_dimension_numbers<[1], [0], [0], [1], [0, 0, 1, 1], [], []>} : vector<32x60xf32>, vector<60x20xf32>, vector<32x20xf32> -> vector<32x20xf32>
    %c88 = arith.constant 88 : index
    %c0_38 = arith.constant 0 : index
    %34 = vector.load %arg1[%c88, %c0_38] : memref<568x40xf32, #tpu.memory_space<vmem>>, vector<1x20xf32>
    %35 = vector.broadcast %34 : vector<1x20xf32> to vector<32x20xf32>
    %36 = arith.addf %33, %35 : vector<32x20xf32>
    %cst_39 = arith.constant 0.000000e+00 : f32
    %37 = vector.broadcast %cst_39 : f32 to vector<32x20xf32>
    %38 = arith.maximumf %36, %37 : vector<32x20xf32>
    %39 = arith.addf %38, %19 : vector<32x20xf32>
    %cst_40 = arith.constant 0.000000e+00 : f32
    %40 = vector.broadcast %cst_40 : f32 to vector<32x20xf32>
    %41 = arith.maximumf %39, %40 : vector<32x20xf32>
    %42 = vector.shape_cast %41 : vector<32x20xf32> to vector<2x16x20xf32>
    %c0_41 = arith.constant 0 : index
    %c8_42 = arith.constant 8 : index
    %c0_43 = arith.constant 0 : index
    %43 = vector.load %arg3[%c0_41, %c8_42, %c0_43] : memref<2x32x20xf32, #tpu.memory_space<vmem>>, vector<2x16x20xf32>
    tpu.vector_store %arg3[%c0_41, %c8_42, %c0_43], %42 {strides = array<i32>} : memref<2x32x20xf32, #tpu.memory_space<vmem>>, vector<2x16x20xf32>,
    %c0_44 = arith.constant 0 : index
    %c6 = arith.constant 6 : index
    %c0_45 = arith.constant 0 : index
    %44 = vector.load %arg3[%c0_44, %c6, %c0_45] : memref<2x32x20xf32, #tpu.memory_space<vmem>>, vector<2x16x20xf32>
    %c0_46 = arith.constant 0 : index
    %c8_47 = arith.constant 8 : index
    %c0_48 = arith.constant 0 : index
    %45 = vector.load %arg3[%c0_46, %c8_47, %c0_48] : memref<2x32x20xf32, #tpu.memory_space<vmem>>, vector<2x16x20xf32>
    %c0_49 = arith.constant 0 : index
    %c10 = arith.constant 10 : index
    %c0_50 = arith.constant 0 : index
    %46 = vector.load %arg3[%c0_49, %c10, %c0_50] : memref<2x32x20xf32, #tpu.memory_space<vmem>>, vector<2x16x20xf32>
    %47 = tpu.concatenate %44, %45, %46 in 2 : vector<2x16x20xf32>, vector<2x16x20xf32>, vector<2x16x20xf32> -> vector<2x16x60xf32>
    %48 = vector.shape_cast %47 : vector<2x16x60xf32> to vector<32x60xf32>
    %c104 = arith.constant 104 : index
    %c0_51 = arith.constant 0 : index
    %49 = vector.load %arg1[%c104, %c0_51] : memref<568x40xf32, #tpu.memory_space<vmem>>, vector<60x20xf32>
    %cst_52 = arith.constant dense<0.000000e+00> : vector<32x20xf32>
    %50 = tpu.matmul %48, %49, %cst_52 {dimension_numbers = #tpu.dot_dimension_numbers<[1], [0], [0], [1], [0, 0, 1, 1], [], []>} : vector<32x60xf32>, vector<60x20xf32>, vector<32x20xf32> -> vector<32x20xf32>
    %c168 = arith.constant 168 : index
    %c0_53 = arith.constant 0 : index
    %51 = vector.load %arg1[%c168, %c0_53] : memref<568x40xf32, #tpu.memory_space<vmem>>, vector<1x20xf32>
    %52 = vector.broadcast %51 : vector<1x20xf32> to vector<32x20xf32>
    %53 = arith.addf %50, %52 : vector<32x20xf32>
    %cst_54 = arith.constant 0.000000e+00 : f32
    %54 = vector.broadcast %cst_54 : f32 to vector<32x20xf32>
    %55 = arith.maximumf %53, %54 : vector<32x20xf32>
    %56 = vector.shape_cast %55 : vector<32x20xf32> to vector<2x16x20xf32>
    %c0_55 = arith.constant 0 : index
    %c8_56 = arith.constant 8 : index
    %c0_57 = arith.constant 0 : index
    %57 = vector.load %arg3[%c0_55, %c8_56, %c0_57] : memref<2x32x20xf32, #tpu.memory_space<vmem>>, vector<2x16x20xf32>
    tpu.vector_store %arg3[%c0_55, %c8_56, %c0_57], %56 {strides = array<i32>} : memref<2x32x20xf32, #tpu.memory_space<vmem>>, vector<2x16x20xf32>,
    %c0_58 = arith.constant 0 : index
    %c6_59 = arith.constant 6 : index
    %c0_60 = arith.constant 0 : index
    %58 = vector.load %arg3[%c0_58, %c6_59, %c0_60] : memref<2x32x20xf32, #tpu.memory_space<vmem>>, vector<2x16x20xf32>
    %c0_61 = arith.constant 0 : index
    %c8_62 = arith.constant 8 : index
    %c0_63 = arith.constant 0 : index
    %59 = vector.load %arg3[%c0_61, %c8_62, %c0_63] : memref<2x32x20xf32, #tpu.memory_space<vmem>>, vector<2x16x20xf32>
    %c0_64 = arith.constant 0 : index
    %c10_65 = arith.constant 10 : index
    %c0_66 = arith.constant 0 : index
    %60 = vector.load %arg3[%c0_64, %c10_65, %c0_66] : memref<2x32x20xf32, #tpu.memory_space<vmem>>, vector<2x16x20xf32>
    %61 = tpu.concatenate %58, %59, %60 in 2 : vector<2x16x20xf32>, vector<2x16x20xf32>, vector<2x16x20xf32> -> vector<2x16x60xf32>
    %62 = vector.shape_cast %61 : vector<2x16x60xf32> to vector<32x60xf32>
    %c176 = arith.constant 176 : index
    %c0_67 = arith.constant 0 : index
    %63 = vector.load %arg1[%c176, %c0_67] : memref<568x40xf32, #tpu.memory_space<vmem>>, vector<60x20xf32>
    %cst_68 = arith.constant dense<0.000000e+00> : vector<32x20xf32>
    %64 = tpu.matmul %62, %63, %cst_68 {dimension_numbers = #tpu.dot_dimension_numbers<[1], [0], [0], [1], [0, 0, 1, 1], [], []>} : vector<32x60xf32>, vector<60x20xf32>, vector<32x20xf32> -> vector<32x20xf32>
    %c240 = arith.constant 240 : index
    %c0_69 = arith.constant 0 : index
    %65 = vector.load %arg1[%c240, %c0_69] : memref<568x40xf32, #tpu.memory_space<vmem>>, vector<1x20xf32>
    %66 = vector.broadcast %65 : vector<1x20xf32> to vector<32x20xf32>
    %67 = arith.addf %64, %66 : vector<32x20xf32>
    %cst_70 = arith.constant 0.000000e+00 : f32
    %68 = vector.broadcast %cst_70 : f32 to vector<32x20xf32>
    %69 = arith.maximumf %67, %68 : vector<32x20xf32>
    %70 = arith.addf %69, %41 : vector<32x20xf32>
    %cst_71 = arith.constant 0.000000e+00 : f32
    %71 = vector.broadcast %cst_71 : f32 to vector<32x20xf32>
    %72 = arith.maximumf %70, %71 : vector<32x20xf32>
    %73 = vector.shape_cast %72 : vector<32x20xf32> to vector<2x16x20xf32>
    %c0_72 = arith.constant 0 : index
    %c8_73 = arith.constant 8 : index
    %c0_74 = arith.constant 0 : index
    %74 = vector.load %arg3[%c0_72, %c8_73, %c0_74] : memref<2x32x20xf32, #tpu.memory_space<vmem>>, vector<2x16x20xf32>
    tpu.vector_store %arg3[%c0_72, %c8_73, %c0_74], %73 {strides = array<i32>} : memref<2x32x20xf32, #tpu.memory_space<vmem>>, vector<2x16x20xf32>,
    %c0_75 = arith.constant 0 : index
    %c4 = arith.constant 4 : index
    %c0_76 = arith.constant 0 : index
    %75 = vector.load %arg3[%c0_75, %c4, %c0_76] : memref<2x32x20xf32, #tpu.memory_space<vmem>>, vector<2x16x20xf32>
    %c0_77 = arith.constant 0 : index
    %c8_78 = arith.constant 8 : index
    %c0_79 = arith.constant 0 : index
    %76 = vector.load %arg3[%c0_77, %c8_78, %c0_79] : memref<2x32x20xf32, #tpu.memory_space<vmem>>, vector<2x16x20xf32>
    %c0_80 = arith.constant 0 : index
    %c12 = arith.constant 12 : index
    %c0_81 = arith.constant 0 : index
    %77 = vector.load %arg3[%c0_80, %c12, %c0_81] : memref<2x32x20xf32, #tpu.memory_space<vmem>>, vector<2x16x20xf32>
    %78 = tpu.concatenate %75, %76, %77 in 2 : vector<2x16x20xf32>, vector<2x16x20xf32>, vector<2x16x20xf32> -> vector<2x16x60xf32>
    %79 = vector.shape_cast %78 : vector<2x16x60xf32> to vector<32x60xf32>
    %c248 = arith.constant 248 : index
    %c0_82 = arith.constant 0 : index
    %80 = vector.load %arg1[%c248, %c0_82] : memref<568x40xf32, #tpu.memory_space<vmem>>, vector<60x20xf32>
    %cst_83 = arith.constant dense<0.000000e+00> : vector<32x20xf32>
    %81 = tpu.matmul %79, %80, %cst_83 {dimension_numbers = #tpu.dot_dimension_numbers<[1], [0], [0], [1], [0, 0, 1, 1], [], []>} : vector<32x60xf32>, vector<60x20xf32>, vector<32x20xf32> -> vector<32x20xf32>
    %c312 = arith.constant 312 : index
    %c0_84 = arith.constant 0 : index
    %82 = vector.load %arg1[%c312, %c0_84] : memref<568x40xf32, #tpu.memory_space<vmem>>, vector<1x20xf32>
    %83 = vector.broadcast %82 : vector<1x20xf32> to vector<32x20xf32>
    %84 = arith.addf %81, %83 : vector<32x20xf32>
    %cst_85 = arith.constant 0.000000e+00 : f32
    %85 = vector.broadcast %cst_85 : f32 to vector<32x20xf32>
    %86 = arith.maximumf %84, %85 : vector<32x20xf32>
    %87 = vector.shape_cast %86 : vector<32x20xf32> to vector<2x16x20xf32>
    %c0_86 = arith.constant 0 : index
    %c8_87 = arith.constant 8 : index
    %c0_88 = arith.constant 0 : index
    %88 = vector.load %arg3[%c0_86, %c8_87, %c0_88] : memref<2x32x20xf32, #tpu.memory_space<vmem>>, vector<2x16x20xf32>
    tpu.vector_store %arg3[%c0_86, %c8_87, %c0_88], %87 {strides = array<i32>} : memref<2x32x20xf32, #tpu.memory_space<vmem>>, vector<2x16x20xf32>,
    %c0_89 = arith.constant 0 : index
    %c4_90 = arith.constant 4 : index
    %c0_91 = arith.constant 0 : index
    %89 = vector.load %arg3[%c0_89, %c4_90, %c0_91] : memref<2x32x20xf32, #tpu.memory_space<vmem>>, vector<2x16x20xf32>
    %c0_92 = arith.constant 0 : index
    %c8_93 = arith.constant 8 : index
    %c0_94 = arith.constant 0 : index
    %90 = vector.load %arg3[%c0_92, %c8_93, %c0_94] : memref<2x32x20xf32, #tpu.memory_space<vmem>>, vector<2x16x20xf32>
    %c0_95 = arith.constant 0 : index
    %c12_96 = arith.constant 12 : index
    %c0_97 = arith.constant 0 : index
    %91 = vector.load %arg3[%c0_95, %c12_96, %c0_97] : memref<2x32x20xf32, #tpu.memory_space<vmem>>, vector<2x16x20xf32>
    %92 = tpu.concatenate %89, %90, %91 in 2 : vector<2x16x20xf32>, vector<2x16x20xf32>, vector<2x16x20xf32> -> vector<2x16x60xf32>
    %93 = vector.shape_cast %92 : vector<2x16x60xf32> to vector<32x60xf32>
    %c320 = arith.constant 320 : index
    %c0_98 = arith.constant 0 : index
    %94 = vector.load %arg1[%c320, %c0_98] : memref<568x40xf32, #tpu.memory_space<vmem>>, vector<60x20xf32>
    %cst_99 = arith.constant dense<0.000000e+00> : vector<32x20xf32>
    %95 = tpu.matmul %93, %94, %cst_99 {dimension_numbers = #tpu.dot_dimension_numbers<[1], [0], [0], [1], [0, 0, 1, 1], [], []>} : vector<32x60xf32>, vector<60x20xf32>, vector<32x20xf32> -> vector<32x20xf32>
    %c384 = arith.constant 384 : index
    %c0_100 = arith.constant 0 : index
    %96 = vector.load %arg1[%c384, %c0_100] : memref<568x40xf32, #tpu.memory_space<vmem>>, vector<1x20xf32>
    %97 = vector.broadcast %96 : vector<1x20xf32> to vector<32x20xf32>
    %98 = arith.addf %95, %97 : vector<32x20xf32>
    %cst_101 = arith.constant 0.000000e+00 : f32
    %99 = vector.broadcast %cst_101 : f32 to vector<32x20xf32>
    %100 = arith.maximumf %98, %99 : vector<32x20xf32>
    %101 = arith.addf %100, %72 : vector<32x20xf32>
    %cst_102 = arith.constant 0.000000e+00 : f32
    %102 = vector.broadcast %cst_102 : f32 to vector<32x20xf32>
    %103 = arith.maximumf %101, %102 : vector<32x20xf32>
    %104 = vector.shape_cast %103 : vector<32x20xf32> to vector<2x16x20xf32>
    %c0_103 = arith.constant 0 : index
    %c8_104 = arith.constant 8 : index
    %c0_105 = arith.constant 0 : index
    %105 = vector.load %arg3[%c0_103, %c8_104, %c0_105] : memref<2x32x20xf32, #tpu.memory_space<vmem>>, vector<2x16x20xf32>
    tpu.vector_store %arg3[%c0_103, %c8_104, %c0_105], %104 {strides = array<i32>} : memref<2x32x20xf32, #tpu.memory_space<vmem>>, vector<2x16x20xf32>,
    %c0_106 = arith.constant 0 : index
    %c0_107 = arith.constant 0 : index
    %c0_108 = arith.constant 0 : index
    %106 = vector.load %arg3[%c0_106, %c0_107, %c0_108] : memref<2x32x20xf32, #tpu.memory_space<vmem>>, vector<2x16x20xf32>
    %c0_109 = arith.constant 0 : index
    %c8_110 = arith.constant 8 : index
    %c0_111 = arith.constant 0 : index
    %107 = vector.load %arg3[%c0_109, %c8_110, %c0_111] : memref<2x32x20xf32, #tpu.memory_space<vmem>>, vector<2x16x20xf32>
    %c0_112 = arith.constant 0 : index
    %c16_113 = arith.constant 16 : index
    %c0_114 = arith.constant 0 : index
    %108 = vector.load %arg3[%c0_112, %c16_113, %c0_114] : memref<2x32x20xf32, #tpu.memory_space<vmem>>, vector<2x16x20xf32>
    %109 = tpu.concatenate %106, %107, %108 in 2 : vector<2x16x20xf32>, vector<2x16x20xf32>, vector<2x16x20xf32> -> vector<2x16x60xf32>
    %110 = vector.shape_cast %109 : vector<2x16x60xf32> to vector<32x60xf32>
    %c392 = arith.constant 392 : index
    %c0_115 = arith.constant 0 : index
    %111 = vector.load %arg1[%c392, %c0_115] : memref<568x40xf32, #tpu.memory_space<vmem>>, vector<60x20xf32>
    %cst_116 = arith.constant dense<0.000000e+00> : vector<32x20xf32>
    %112 = tpu.matmul %110, %111, %cst_116 {dimension_numbers = #tpu.dot_dimension_numbers<[1], [0], [0], [1], [0, 0, 1, 1], [], []>} : vector<32x60xf32>, vector<60x20xf32>, vector<32x20xf32> -> vector<32x20xf32>
    %c456 = arith.constant 456 : index
    %c0_117 = arith.constant 0 : index
    %113 = vector.load %arg1[%c456, %c0_117] : memref<568x40xf32, #tpu.memory_space<vmem>>, vector<1x20xf32>
    %114 = vector.broadcast %113 : vector<1x20xf32> to vector<32x20xf32>
    %115 = arith.addf %112, %114 : vector<32x20xf32>
    %cst_118 = arith.constant 0.000000e+00 : f32
    %116 = vector.broadcast %cst_118 : f32 to vector<32x20xf32>
    %117 = arith.maximumf %115, %116 : vector<32x20xf32>
    %118 = vector.shape_cast %117 : vector<32x20xf32> to vector<2x16x20xf32>
    %c0_119 = arith.constant 0 : index
    %c8_120 = arith.constant 8 : index
    %c0_121 = arith.constant 0 : index
    %119 = vector.load %arg3[%c0_119, %c8_120, %c0_121] : memref<2x32x20xf32, #tpu.memory_space<vmem>>, vector<2x16x20xf32>
    tpu.vector_store %arg3[%c0_119, %c8_120, %c0_121], %118 {strides = array<i32>} : memref<2x32x20xf32, #tpu.memory_space<vmem>>, vector<2x16x20xf32>,
    %c0_122 = arith.constant 0 : index
    %c0_123 = arith.constant 0 : index
    %c0_124 = arith.constant 0 : index
    %120 = vector.load %arg3[%c0_122, %c0_123, %c0_124] : memref<2x32x20xf32, #tpu.memory_space<vmem>>, vector<2x16x20xf32>
    %c0_125 = arith.constant 0 : index
    %c8_126 = arith.constant 8 : index
    %c0_127 = arith.constant 0 : index
    %121 = vector.load %arg3[%c0_125, %c8_126, %c0_127] : memref<2x32x20xf32, #tpu.memory_space<vmem>>, vector<2x16x20xf32>
    %c0_128 = arith.constant 0 : index
    %c16_129 = arith.constant 16 : index
    %c0_130 = arith.constant 0 : index
    %122 = vector.load %arg3[%c0_128, %c16_129, %c0_130] : memref<2x32x20xf32, #tpu.memory_space<vmem>>, vector<2x16x20xf32>
    %123 = tpu.concatenate %120, %121, %122 in 2 : vector<2x16x20xf32>, vector<2x16x20xf32>, vector<2x16x20xf32> -> vector<2x16x60xf32>
    %124 = vector.shape_cast %123 : vector<2x16x60xf32> to vector<32x60xf32>
    %c464 = arith.constant 464 : index
    %c0_131 = arith.constant 0 : index
    %125 = vector.load %arg1[%c464, %c0_131] : memref<568x40xf32, #tpu.memory_space<vmem>>, vector<60x20xf32>
    %cst_132 = arith.constant dense<0.000000e+00> : vector<32x20xf32>
    %126 = tpu.matmul %124, %125, %cst_132 {dimension_numbers = #tpu.dot_dimension_numbers<[1], [0], [0], [1], [0, 0, 1, 1], [], []>} : vector<32x60xf32>, vector<60x20xf32>, vector<32x20xf32> -> vector<32x20xf32>
    %c528 = arith.constant 528 : index
    %c0_133 = arith.constant 0 : index
    %127 = vector.load %arg1[%c528, %c0_133] : memref<568x40xf32, #tpu.memory_space<vmem>>, vector<1x20xf32>
    %128 = vector.broadcast %127 : vector<1x20xf32> to vector<32x20xf32>
    %129 = arith.addf %126, %128 : vector<32x20xf32>
    %cst_134 = arith.constant 0.000000e+00 : f32
    %130 = vector.broadcast %cst_134 : f32 to vector<32x20xf32>
    %131 = arith.maximumf %129, %130 : vector<32x20xf32>
    %132 = arith.addf %131, %103 : vector<32x20xf32>
    %cst_135 = arith.constant 0.000000e+00 : f32
    %133 = vector.broadcast %cst_135 : f32 to vector<32x20xf32>
    %134 = arith.maximumf %132, %133 : vector<32x20xf32>
    %135 = vector.shape_cast %134 : vector<32x20xf32> to vector<2x16x20xf32>
    %136 = vector.extract_strided_slice %135 {offsets = [0, 15, 0], sizes = [2, 1, 20], strides = [1, 1, 1]} : vector<2x16x20xf32> to vector<2x1x20xf32>
    %137 = vector.shape_cast %136 : vector<2x1x20xf32> to vector<2x20xf32>
    %c536 = arith.constant 536 : index
    %c0_136 = arith.constant 0 : index
    %138 = vector.load %arg1[%c536, %c0_136] : memref<568x40xf32, #tpu.memory_space<vmem>>, vector<20x3xf32>
    %cst_137 = arith.constant dense<0.000000e+00> : vector<2x3xf32>
    %139 = tpu.matmul %137, %138, %cst_137 {dimension_numbers = #tpu.dot_dimension_numbers<[1], [0], [0], [1], [0, 0, 1, 1], [], []>} : vector<2x20xf32>, vector<20x3xf32>, vector<2x3xf32> -> vector<2x3xf32>
    %c560 = arith.constant 560 : index
    %c0_138 = arith.constant 0 : index
    %140 = vector.load %arg1[%c560, %c0_138] : memref<568x40xf32, #tpu.memory_space<vmem>>, vector<1x3xf32>
    %141 = vector.broadcast %140 : vector<1x3xf32> to vector<2x3xf32>
    %142 = arith.addf %139, %141 : vector<2x3xf32>
    %143 = vector.shape_cast %142 : vector<2x3xf32> to vector<2x1x3xf32>
    %c0_139 = arith.constant 0 : index
    %c0_140 = arith.constant 0 : index
    %c0_141 = arith.constant 0 : index
    %144 = vector.load %arg2[%c0_139, %c0_140, %c0_141] : memref<2x1x3xf32, #tpu.memory_space<vmem>>, vector<2x1x3xf32>
    tpu.vector_store %arg2[%c0_139, %c0_140, %c0_141], %143 {strides = array<i32>} : memref<2x1x3xf32, #tpu.memory_space<vmem>>, vector<2x1x3xf32>,
    return
  }
}

</mosaic_0001>

<bundles_post_ra>
// kernel: forward.1
= control target key start
LH: loop header
LB: loop body
LE: loop exit
PB: predicated region body
PF: predicated region fallthrough
CT: control target
= control target key end

     0   :  { %vm21_vm0 = vcmask 23552   ;;  %vm12_vm1 = vcmask 162816   ;;  %v1119_v2 = vmov 0.0   ;;  %s1671_s0 = inlined_call_operand.vmem [shape: f32[2,16,3], index: 0, kind: input, shape index: {}]   ;;  %s1672_s1 = inlined_call_operand.vmem [shape: f32[568,40], index: 1, kind: input, shape index: {}]   ;;  %s1673_s2 = inlined_call_operand.hbm [shape: f32[2,1,3], index: 2, kind: output, shape index: {}]  }
   0x1   :  { %v17_v0 = vld [vmem:[%s1671_s0] sm:$0xff]  ;;  %v18_v1 = vld [vmem:[%s1671_s0 + $0x8] sm:$0xff]  ;;  %15 = vst.msk [vmem:[#allocation2 + $0x18] sm:$0xff] %vm12_vm1, %v1119_v2  ;;  %v20_v3 = vld [vmem:[%s1671_s0 + $0x18] sm:$0xff] }
   0x2   :  { %22 = vst.msk [vmem:[#allocation2 + $0x8] sm:$0xff] %vm21_vm0, %v17_v0  ;;  %v19_v4 = vld [vmem:[%s1671_s0 + $0x10] sm:$0xff] }
   0x3   :  { %23 = vst.msk [vmem:[#allocation2 + $0x10] sm:$0xff] %vm21_vm0, %v18_v1 }
   0x4   :  { %13 = vst.msk [vmem:[#allocation2] sm:$0xff] %vm12_vm1, %v1119_v2 }
   0x5   :  { %14 = vst.msk [vmem:[#allocation2 + $0x20] sm:$0xff] %vm12_vm1, %v1119_v2 }
   0x6   :  { %16 = vst.msk [vmem:[#allocation2 + $0x38] sm:$0xff] %vm12_vm1, %v1119_v2 }
   0x7   :  { %7 = vsyncpa [#allocation4], 0  ;;  %25 = vst.msk [vmem:[#allocation2 + $0x30] sm:$0xff] %vm21_vm0, %v20_v3  ;;  %s1120_s17 = smov 3   ;;  %s1121_s18 = smov 6   ;;  %vm94_vm2 = vcmask 1040384  }
   0x8   :  { %24 = vst.msk [vmem:[#allocation2 + $0x28] sm:$0xff] %vm21_vm0, %v19_v4  ;;  %v80_v13 = vld [vmem:[%s1672_s1 + $0x8] sm:$0x1]  ;;  %v79_v14 = vld [vmem:[%s1672_s1] sm:$0xff]  ;;  %vm74_vm3 = vcmask 48128   ;;  %vm81_vm4 = vcmask 72704  }
   0x9   :  { %v30_v5 = vld [vmem:[#allocation2 + $0x8] sm:$0xff]  ;;  %1032 = vmatpush.msk.msra.mxu0 %vm94_vm2, %v80_v13  ;;  %v1083_v35 = vld [vmem:[%s1672_s1 + $0x10] ss:$0 sm:$0xff]  ;;  %s1122_s24 = smov 20   ;;  %s1123_s25 = smov 40   ;;  %vm227_vm5 = vcmask 1043456  }
   0xa   :  { %42 = vrot.lane.b32.xlu0 %v30_v5, %s1120_s17  ;;  %v31_v6 = vld [vmem:[#allocation2 + $0x10] sm:$0xff]  ;;  %v1084_v56 = vld [vmem:[%s1672_s1 + $0x60] ss:$0 sm:$0xff]  ;;  %v210_v58 = vld [vmem:[%s1672_s1 + $0x48] sm:$0xff]  ;;  %vm199_vm6 = vcmask 326656   ;;  %vm214_vm7 = vcmask 490496  }
   0xb   :  { %44 = vrot.lane.b32.xlu1 %v31_v6, %s1120_s17  ;;  %v34_v7 = vld [vmem:[#allocation2 + $0x9] sm:$0xff]  ;;  %v35_v8 = vld [vmem:[#allocation2 + $0x11] sm:$0xff]  ;;  %113 = vmatpush.msra.mxu0 %v79_v14  ;;  %v209_v59 = vld [vmem:[%s1672_s1 + $0x40] sm:$0xff]  ;;  %s1124_s16 = smov 108   ;;  %vm981_vm8 = vcmask 1041409   ;;  %s1125_s26 = smov [#allocation3]  }
   0xc   :  { %v26_v17 = vld [vmem:[#allocation2 + $0x7] sm:$0xff]  ;;  %v27_v21 = vld [vmem:[#allocation2 + $0xf] sm:$0xff]  ;;  %v208_v60 = vld [vmem:[%s1672_s1 + $0x38] sm:$0xff]  ;;  %s1018_s27 = sshll.u32 %s1125_s26, 4  ;;  %s1020_s30 = sshll.u32 %s1673_s2, 4  ;;  %vm1011_vm9 = vcmask 16384   ;;  %s1019_s27 = int_to_ptr.vmem [resolvable:$true] %s1018_s27  ;;  %s1021_s30 = int_to_ptr.hbm [resolvable:$true] %s1020_s30 }
   0xd   :  { %v211_v57 = vld [vmem:[%s1672_s1 + $0x50] sm:$0xf]  ;;  %v206_v62 = vld [vmem:[%s1672_s1 + $0x28] sm:$0xff]  ;;  %v205_v63 = vld [vmem:[%s1672_s1 + $0x20] sm:$0xff]  ;;  %s1126_s3 = smov 16   ;;  %s1127_s4 = smov 1  }
   0xe   :  { %v33_v11 = vld [vmem:[#allocation2 + $0x30] sm:$0xff]  ;;  %1037 = vmatpush.msk.msra.mxu1 %vm227_vm5, %v211_v57  ;;  %v204_v0 = vld [vmem:[%s1672_s1 + $0x18] sm:$0xff] }
   0xf   :  { %v32_v9 = vld [vmem:[#allocation2 + $0x28] sm:$0xff]  ;;  %v37_v12 = vld [vmem:[#allocation2 + $0x31] sm:$0xff] }
  0x10   :  { %46 = vrot.lane.b32.xlu2 %v32_v9, %s1120_s17  ;;  %v36_v10 = vld [vmem:[#allocation2 + $0x29] sm:$0xff]  ;;  %240 = vmatpush.msra.mxu1 %v210_v58 }
  0x11   :  { %v28_v26 = vld [vmem:[#allocation2 + $0x27] sm:$0xff]  ;;  %v29_v30 = vld [vmem:[#allocation2 + $0x2f] sm:$0xff] }
  0x12   :  { %58 = vrot.lane.b32.xlu0 %v34_v7, %s1121_s18  ;;  %241 = vmatpush.msra.mxu1 %v209_v59  ;;  %v207_v61 = vld [vmem:[%s1672_s1 + $0x30] sm:$0xff]  ;;  %v351_v59 = vld [vmem:[%s1672_s1 + $0xa0] sm:$0xf] }
  0x13   :  { %60 = vrot.lane.b32.xlu1 %v35_v8, %s1121_s18  ;;  %1042 = vmatpush.msk.msra.mxu2 %vm227_vm5, %v351_v59  ;;  %v458_v59 = vld [vmem:[%s1672_s1 + $0xb0] sm:$0xff] }
  0x14   :  { %242 = vmatpush.msra.mxu1 %v208_v60  ;;  %v350_v60 = vld [vmem:[%s1672_s1 + $0x98] sm:$0xff] }
  0x15   :  { %378 = vmatpush.msra.mxu2 %v350_v60 }
  0x16   :  { %243 = vmatpush.msra.mxu1 %v207_v61  ;;  %v349_v61 = vld [vmem:[%s1672_s1 + $0x90] sm:$0xff] }
  0x17   :  { %379 = vmatpush.msra.mxu2 %v349_v61 }
  0x18   :  { %62 = vrot.lane.b32.xlu2 %v36_v10, %s1121_s18  ;;  %244 = vmatpush.msra.mxu1 %v206_v62  ;;  %v348_v62 = vld [vmem:[%s1672_s1 + $0x88] sm:$0xff] }
  0x19   :  { %380 = vmatpush.msra.mxu2 %v348_v62 }
  0x1a   :  { %48 = vrot.lane.b32.xlu0 %v33_v11, %s1120_s17  ;;  %245 = vmatpush.msra.mxu1 %v205_v63  ;;  %v347_v63 = vld [vmem:[%s1672_s1 + $0x80] sm:$0xff] }
  0x1b   :  { %64 = vrot.lane.b32.xlu1 %v37_v12, %s1121_s18  ;;  %381 = vmatpush.msra.mxu2 %v347_v63 }
  0x1c   :  { %246 = vmatpush.msra.mxu1 %v204_v0  ;;  %v346_v0 = vld [vmem:[%s1672_s1 + $0x78] sm:$0xff] }
  0x1d   :  { %382 = vmatpush.msra.mxu2 %v346_v0 }
  0x6a   :  { %v47_v22 = vpop.permute.xlu2 %46 }
  0x6b   :  { %v72_v27 = vsel %vm21_vm0, %v28_v26, %v47_v22  ;;  %v1085_v26 = vld [vmem:[%s1672_s1 + $0x58] ss:$0 sm:$0xff] }
  0x72   :  { %v63_v28 = vpop.permute.xlu2 %62 }
  0x73   :  { %v77_v29 = vsel %vm74_vm3, %v72_v27, %v63_v28 }
  0x7c   :  { %v43_v15 = vpop.permute.xlu0 %42 }
  0x7d   :  { %v45_v16 = vpop.permute.xlu1 %44  ;;  %v70_v18 = vsel %vm21_vm0, %v26_v17, %v43_v15 }
  0x7e   :  { %v71_v23 = vsel %vm21_vm0, %v27_v21, %v45_v16 }
  0x84   :  { %v59_v19 = vpop.permute.xlu0 %58 }
  0x85   :  { %v75_v20 = vsel %vm74_vm3, %v70_v18, %v59_v19  ;;  %v61_v24 = vpop.permute.xlu1 %60 }
  0x86   :  { %1033 = vmatmul.msk.f32.vlgmr.msra.gmra.mxu0 %vm81_vm4, %v75_v20  ;;  %v76_v25 = vsel %vm74_vm3, %v71_v23, %v61_v24 }
  0x8c   :  { %v49_v31 = vpop.permute.xlu0 %48 }
  0x8d   :  { %v73_v32 = vsel %vm21_vm0, %v29_v30, %v49_v31  ;;  %v65_v33 = vpop.permute.xlu1 %64 }
  0x8e   :  { %1034 = vmatmul.msk.f32.gmra.mxu0 %vm81_vm4, %v76_v25  ;;  %v78_v34 = vsel %vm74_vm3, %v73_v32, %v65_v33 }
  0x96   :  { %1035 = vmatmul.msk.f32.gmra.mxu0 %vm81_vm4, %v77_v29 }
  0x9e   :  { %1036 = vmatmul.msk.f32.gmra.mxu0 %vm81_vm4, %v78_v34 }
 0x103   :  { %v1184_v36 = vpop.f32.mrf.mxu0 }
 0x104   :  { %v139_v37 = vadd.f32 %v1083_v35, %v1184_v36 }
 0x106   :  { %v143_v38 = vmax.f32 %v139_v37, 0.0 }
 0x108   :  { %147 = vst.msk [vmem:[#allocation2 + $0x8] sm:$0xff] %vm12_vm1, %v143_v38 }
 0x10b   :  { %v1188_v39 = vpop.f32.mrf.mxu0 }
 0x10c   :  { %v140_v40 = vadd.f32 %v1083_v35, %v1188_v39 }
 0x10e   :  { %v144_v41 = vmax.f32 %v140_v40, 0.0 }
 0x10f   :  { %v155_v42 = vld [vmem:[#allocation2 + $0x8] sm:$0xff] }
 0x110   :  { %148 = vst.msk [vmem:[#allocation2 + $0x10] sm:$0xff] %vm12_vm1, %v144_v41  ;;  %167 = vrot.lane.b32.xlu2 %v155_v42, %s1122_s24  ;;  %v151_v2 = vld [vmem:[#allocation2 + $0x7] sm:$0xff] }
 0x113   :  { %v1193_v43 = vpop.f32.mrf.mxu0 }
 0x114   :  { %v141_v44 = vadd.f32 %v1083_v35, %v1193_v43 }
 0x116   :  { %v145_v45 = vmax.f32 %v141_v44, 0.0 }
 0x117   :  { %v160_v46 = vld [vmem:[#allocation2 + $0x11] sm:$0xff]  ;;  %v159_v47 = vld [vmem:[#allocation2 + $0x9] sm:$0xff] }
 0x118   :  { %v156_v48 = vld [vmem:[#allocation2 + $0x10] sm:$0xff]  ;;  %149 = vst.msk [vmem:[#allocation2 + $0x28] sm:$0xff] %vm12_vm1, %v145_v45  ;;  %185 = vrot.lane.b32.xlu2 %v160_v46, %s1123_s25  ;;  %183 = vrot.lane.b32.xlu0 %v159_v47, %s1123_s25 }
 0x119   :  { %169 = vrot.lane.b32.xlu1 %v156_v48, %s1122_s24  ;;  %v152_v7 = vld [vmem:[#allocation2 + $0xf] sm:$0xff] }
 0x11b   :  { %v1200_v49 = vpop.f32.mrf.mxu0 }
 0x11c   :  { %v142_v50 = vadd.f32 %v1083_v35, %v1200_v49 }
 0x11e   :  { %v146_v51 = vmax.f32 %v142_v50, 0.0 }
 0x11f   :  { %v157_v52 = vld [vmem:[#allocation2 + $0x28] sm:$0xff] }
 0x120   :  { %150 = vst.msk [vmem:[#allocation2 + $0x30] sm:$0xff] %vm12_vm1, %v146_v51  ;;  %171 = vrot.lane.b32.xlu0 %v157_v52, %s1122_s24  ;;  %v153_v12 = vld [vmem:[#allocation2 + $0x27] sm:$0xff] }
 0x127   :  { %v162_v53 = vld [vmem:[#allocation2 + $0x31] sm:$0xff]  ;;  %v161_v54 = vld [vmem:[#allocation2 + $0x29] sm:$0xff] }
 0x128   :  { %v158_v55 = vld [vmem:[#allocation2 + $0x30] sm:$0xff]  ;;  %189 = vrot.lane.b32.xlu0 %v162_v53, %s1123_s25  ;;  %187 = vrot.lane.b32.xlu1 %v161_v54, %s1123_s25 }
 0x129   :  { %173 = vrot.lane.b32.xlu2 %v158_v55, %s1122_s24  ;;  %v154_v18 = vld [vmem:[#allocation2 + $0x2f] sm:$0xff] }
 0x130   :  { %130 = vrot.lane.b32.xlu1 %v1084_v56, %s1122_s24 }
 0x16a   :  { %v168_v1 = vpop.permute.xlu2 %167 }
 0x16b   :  { %v195_v3 = vsel %vm12_vm1, %v151_v2, %v168_v1  ;;  %v345_v1 = vld [vmem:[%s1672_s1 + $0x70] sm:$0xff]  ;;  %v344_v2 = vld [vmem:[%s1672_s1 + $0x68] sm:$0xff] }
 0x16c   :  { %383 = vmatpush.msra.mxu2 %v345_v1 }
 0x16e   :  { %384 = vmatpush.msra.mxu2 %v344_v2 }
 0x172   :  { %v186_v9 = vpop.permute.xlu2 %185 }
 0x183   :  { %v174_v16 = vpop.permute.xlu2 %173 }
 0x184   :  { %v198_v19 = vsel %vm12_vm1, %v154_v18, %v174_v16 }
 0x18a   :  { %v184_v4 = vpop.permute.xlu0 %183 }
 0x18b   :  { %v200_v5 = vsel %vm199_vm6, %v195_v3, %v184_v4  ;;  %v170_v6 = vpop.permute.xlu1 %169 }
 0x18c   :  { %1038 = vmatmul.msk.f32.vlgmr.msra.gmra.mxu1 %vm214_vm7, %v200_v5  ;;  %v196_v8 = vsel %vm12_vm1, %v152_v7, %v170_v6 }
 0x18d   :  { %v201_v10 = vsel %vm199_vm6, %v196_v8, %v186_v9 }
 0x192   :  { %v172_v11 = vpop.permute.xlu0 %171 }
 0x193   :  { %v197_v13 = vsel %vm12_vm1, %v153_v12, %v172_v11 }
 0x194   :  { %1039 = vmatmul.msk.f32.gmra.mxu1 %vm214_vm7, %v201_v10 }
 0x19a   :  { %v188_v14 = vpop.permute.xlu1 %187  ;;  %v190_v17 = vpop.permute.xlu0 %189 }
 0x19b   :  { %v202_v15 = vsel %vm199_vm6, %v197_v13, %v188_v14  ;;  %v203_v21 = vsel %vm199_vm6, %v198_v19, %v190_v17 }
 0x19c   :  { %1040 = vmatmul.msk.f32.gmra.mxu1 %vm214_vm7, %v202_v15 }
 0x1a2   :  { %v131_v20 = vpop.permute.xlu1 %130 }
 0x1a3   :  { %v135_v22 = vadd.f32 %v131_v20, %v1193_v43  ;;  %v134_v23 = vadd.f32 %v131_v20, %v1188_v39  ;;  %v133_v24 = vadd.f32 %v131_v20, %v1184_v36  ;;  %v136_v25 = vadd.f32 %v131_v20, %v1200_v49 }
 0x1a4   :  { %1041 = vmatmul.msk.f32.gmra.mxu1 %vm214_vm7, %v203_v21 }
 0x1a5   :  { %272 = vrot.lane.b32.xlu1 %v135_v22, %s1124_s16  ;;  %270 = vrot.lane.b32.xlu0 %v134_v23, %s1124_s16  ;;  %v1086_v23 = vld [vmem:[%s1672_s1 + $0xa8] ss:$0 sm:$0xff] }
 0x1a6   :  { %268 = vrot.lane.b32.xlu2 %v133_v24, %s1124_s16 }
 0x1ae   :  { %274 = vrot.lane.b32.xlu2 %v136_v25, %s1124_s16 }
 0x200   :  { %v269_v30 = vpop.permute.xlu2 %268 }
 0x208   :  { %v275_v52 = vpop.permute.xlu2 %274 }
 0x209   :  { %v248_v27 = vpop.f32.mrf.mxu1 }
 0x20a   :  { %v249_v28 = vadd.f32 %v1085_v26, %v248_v27 }
 0x20c   :  { %v260_v29 = vmax.f32 %v249_v28, 0.0 }
 0x20e   :  { %v1256_v31 = vadd.f32 %v269_v30, %v260_v29 }
 0x210   :  { %v284_v32 = vmax.f32 %v1256_v31, 0.0  ;;  %v583_v31 = vld [vmem:[%s1672_s1 + $0x120] sm:$0xff] }
 0x211   :  { %v251_v33 = vpop.f32.mrf.mxu1 }
 0x212   :  { %288 = vst.msk [vmem:[#allocation2 + $0x8] sm:$0xff] %vm12_vm1, %v284_v32  ;;  %v252_v34 = vadd.f32 %v1085_v26, %v251_v33 }
 0x214   :  { %v261_v35 = vmax.f32 %v252_v34, 0.0 }
 0x217   :  { %v271_v36 = vpop.permute.xlu0 %270  ;;  %v273_v43 = vpop.permute.xlu1 %272 }
 0x218   :  { %v1262_v37 = vadd.f32 %v271_v36, %v261_v35 }
 0x219   :  { %v254_v38 = vpop.f32.mrf.mxu1  ;;  %v296_v39 = vld [vmem:[#allocation2 + $0x8] sm:$0xff] }
 0x21a   :  { %v285_v40 = vmax.f32 %v1262_v37, 0.0  ;;  %v255_v41 = vadd.f32 %v1085_v26, %v254_v38  ;;  %308 = vrot.lane.b32.xlu0 %v296_v39, %s1122_s24  ;;  %v292_v4 = vld [vmem:[#allocation2 + $0x6] sm:$0xff] }
 0x21c   :  { %289 = vst.msk [vmem:[#allocation2 + $0x10] sm:$0xff] %vm12_vm1, %v285_v40  ;;  %v262_v42 = vmax.f32 %v255_v41, 0.0 }
 0x21e   :  { %v1269_v44 = vadd.f32 %v273_v43, %v262_v42 }
 0x220   :  { %v286_v45 = vmax.f32 %v1269_v44, 0.0 }
 0x221   :  { %v257_v46 = vpop.f32.mrf.mxu1 }
 0x222   :  { %290 = vst.msk [vmem:[#allocation2 + $0x28] sm:$0xff] %vm12_vm1, %v286_v45  ;;  %v258_v47 = vadd.f32 %v1085_v26, %v257_v46 }
 0x223   :  { %v297_v48 = vld [vmem:[#allocation2 + $0x10] sm:$0xff] }
 0x224   :  { %v300_v49 = vld [vmem:[#allocation2 + $0xa] sm:$0xff]  ;;  %v301_v50 = vld [vmem:[#allocation2 + $0x12] sm:$0xff]  ;;  %v263_v51 = vmax.f32 %v258_v47, 0.0  ;;  %310 = vrot.lane.b32.xlu2 %v297_v48, %s1122_s24 }
 0x225   :  { %324 = vrot.lane.b32.xlu1 %v300_v49, %s1123_s25  ;;  %326 = vrot.lane.b32.xlu0 %v301_v50, %s1123_s25  ;;  %v293_v10 = vld [vmem:[#allocation2 + $0xe] sm:$0xff]  ;;  %v465_v50 = vld [vmem:[%s1672_s1 + $0xe8] sm:$0xf] }
 0x226   :  { %v1278_v53 = vadd.f32 %v275_v52, %v263_v51  ;;  %v464_v51 = vld [vmem:[%s1672_s1 + $0xe0] sm:$0xff]  ;;  %1047 = vmatpush.msk.msra.mxu3 %vm227_vm5, %v465_v50  ;;  %v463_v52 = vld [vmem:[%s1672_s1 + $0xd8] sm:$0xff] }
 0x227   :  { %v578_v50 = vld [vmem:[%s1672_s1 + $0xf8] sm:$0xff] }
 0x228   :  { %v287_v54 = vmax.f32 %v1278_v53, 0.0  ;;  %492 = vmatpush.msra.mxu3 %v464_v51  ;;  %v581_v53 = vld [vmem:[%s1672_s1 + $0x110] sm:$0xff] }
 0x229   :  { %v298_v55 = vld [vmem:[#allocation2 + $0x28] sm:$0xff] }
 0x22a   :  { %291 = vst.msk [vmem:[#allocation2 + $0x30] sm:$0xff] %vm12_vm1, %v287_v54  ;;  %v294_v14 = vld [vmem:[#allocation2 + $0x26] sm:$0xff]  ;;  %493 = vmatpush.msra.mxu3 %v463_v52 }
 0x22d   :  { %312 = vrot.lane.b32.xlu1 %v298_v55, %s1122_s24  ;;  %v462_v55 = vld [vmem:[%s1672_s1 + $0xd0] sm:$0xff] }
 0x22e   :  { %494 = vmatpush.msra.mxu3 %v462_v55 }
 0x231   :  { %v302_v56 = vld [vmem:[#allocation2 + $0x2a] sm:$0xff]  ;;  %v303_v58 = vld [vmem:[#allocation2 + $0x32] sm:$0xff] }
 0x232   :  { %v299_v57 = vld [vmem:[#allocation2 + $0x30] sm:$0xff]  ;;  %328 = vrot.lane.b32.xlu2 %v302_v56, %s1123_s25  ;;  %v461_v56 = vld [vmem:[%s1672_s1 + $0xc8] sm:$0xff] }
 0x233   :  { %314 = vrot.lane.b32.xlu0 %v299_v57, %s1122_s24  ;;  %v295_v19 = vld [vmem:[#allocation2 + $0x2e] sm:$0xff]  ;;  %v460_v57 = vld [vmem:[%s1672_s1 + $0xc0] sm:$0xff]  ;;  %495 = vmatpush.msra.mxu3 %v461_v56 }
 0x235   :  { %330 = vrot.lane.b32.xlu1 %v303_v58, %s1123_s25  ;;  %v459_v58 = vld [vmem:[%s1672_s1 + $0xb8] sm:$0xff]  ;;  %496 = vmatpush.msra.mxu3 %v460_v57 }
 0x237   :  { %497 = vmatpush.msra.mxu3 %v459_v58 }
 0x239   :  { %498 = vmatpush.msra.mxu3 %v458_v59 }
 0x27e   :  { %v311_v8 = vpop.permute.xlu2 %310 }
 0x27f   :  { %v337_v11 = vsel %vm12_vm1, %v293_v10, %v311_v8 }
 0x28c   :  { %v309_v3 = vpop.permute.xlu0 %308  ;;  %v329_v16 = vpop.permute.xlu2 %328 }
 0x28d   :  { %v336_v5 = vsel %vm12_vm1, %v292_v4, %v309_v3 }
 0x297   :  { %v325_v6 = vpop.permute.xlu1 %324  ;;  %v327_v9 = vpop.permute.xlu0 %326 }
 0x298   :  { %v340_v7 = vsel %vm199_vm6, %v336_v5, %v325_v6  ;;  %v341_v12 = vsel %vm199_vm6, %v337_v11, %v327_v9 }
 0x299   :  { %1043 = vmatmul.msk.f32.vlgmr.msra.gmra.mxu2 %vm214_vm7, %v340_v7 }
 0x29f   :  { %v313_v13 = vpop.permute.xlu1 %312 }
 0x2a0   :  { %v338_v15 = vsel %vm12_vm1, %v294_v14, %v313_v13 }
 0x2a1   :  { %1044 = vmatmul.msk.f32.gmra.mxu2 %vm214_vm7, %v341_v12  ;;  %v342_v17 = vsel %vm199_vm6, %v338_v15, %v329_v16  ;;  %v1087_v16 = vld [vmem:[%s1672_s1 + $0xf0] ss:$0 sm:$0xff] }
 0x2a5   :  { %v315_v18 = vpop.permute.xlu0 %314 }
 0x2a6   :  { %v339_v20 = vsel %vm12_vm1, %v295_v19, %v315_v18 }
 0x2a7   :  { %v331_v21 = vpop.permute.xlu1 %330 }
 0x2a8   :  { %v343_v22 = vsel %vm199_vm6, %v339_v20, %v331_v21 }
 0x2a9   :  { %1045 = vmatmul.msk.f32.gmra.mxu2 %vm214_vm7, %v342_v17 }
 0x2b1   :  { %1046 = vmatmul.msk.f32.gmra.mxu2 %vm214_vm7, %v343_v22 }
 0x31c   :  { %v386_v24 = vpop.f32.mrf.mxu2 }
 0x31d   :  { %v387_v25 = vadd.f32 %v1086_v23, %v386_v24  ;;  %v585_v24 = vld [vmem:[%s1672_s1 + $0x130] sm:$0xf] }
 0x31e   :  { %1052 = vmatpush.msk.msrb.mxu0 %vm227_vm5, %v585_v24 }
 0x31f   :  { %v398_v26 = vmax.f32 %v387_v25, 0.0  ;;  %v584_v25 = vld [vmem:[%s1672_s1 + $0x128] sm:$0xff] }
 0x320   :  { %612 = vmatpush.msrb.mxu0 %v584_v25 }
 0x321   :  { %402 = vst.msk [vmem:[#allocation2 + $0x8] sm:$0xff] %vm12_vm1, %v398_v26 }
 0x322   :  { %613 = vmatpush.msrb.mxu0 %v583_v31 }
 0x324   :  { %v389_v27 = vpop.f32.mrf.mxu2 }
 0x325   :  { %v390_v28 = vadd.f32 %v1086_v23, %v389_v27  ;;  %v582_v27 = vld [vmem:[%s1672_s1 + $0x118] sm:$0xff] }
 0x326   :  { %614 = vmatpush.msrb.mxu0 %v582_v27 }
 0x327   :  { %v399_v29 = vmax.f32 %v390_v28, 0.0 }
 0x328   :  { %v410_v30 = vld [vmem:[#allocation2 + $0x8] sm:$0xff]  ;;  %615 = vmatpush.msrb.mxu0 %v581_v53 }
 0x329   :  { %403 = vst.msk [vmem:[#allocation2 + $0x10] sm:$0xff] %vm12_vm1, %v399_v29  ;;  %422 = vrot.lane.b32.xlu2 %v410_v30, %s1122_s24  ;;  %v406_v61 = vld [vmem:[#allocation2 + $0x6] sm:$0xff] }
 0x32c   :  { %v392_v33 = vpop.f32.mrf.mxu2 }
 0x32d   :  { %v393_v34 = vadd.f32 %v1086_v23, %v392_v33 }
 0x32f   :  { %v400_v35 = vmax.f32 %v393_v34, 0.0 }
 0x330   :  { %v411_v36 = vld [vmem:[#allocation2 + $0x10] sm:$0xff] }
 0x331   :  { %v415_v38 = vld [vmem:[#allocation2 + $0x12] sm:$0xff]  ;;  %v414_v39 = vld [vmem:[#allocation2 + $0xa] sm:$0xff]  ;;  %404 = vst.msk [vmem:[#allocation2 + $0x28] sm:$0xff] %vm12_vm1, %v400_v35  ;;  %424 = vrot.lane.b32.xlu1 %v411_v36, %s1122_s24 }
 0x332   :  { %440 = vrot.lane.b32.xlu2 %v415_v38, %s1123_s25  ;;  %438 = vrot.lane.b32.xlu0 %v414_v39, %s1123_s25  ;;  %v407_v2 = vld [vmem:[#allocation2 + $0xe] sm:$0xff] }
 0x334   :  { %v395_v41 = vpop.f32.mrf.mxu2 }
 0x335   :  { %v396_v42 = vadd.f32 %v1086_v23, %v395_v41 }
 0x337   :  { %v401_v43 = vmax.f32 %v396_v42, 0.0 }
 0x338   :  { %v412_v46 = vld [vmem:[#allocation2 + $0x28] sm:$0xff] }
 0x339   :  { %405 = vst.msk [vmem:[#allocation2 + $0x30] sm:$0xff] %vm12_vm1, %v401_v43  ;;  %v408_v7 = vld [vmem:[#allocation2 + $0x26] sm:$0xff] }
 0x33a   :  { %426 = vrot.lane.b32.xlu0 %v412_v46, %s1122_s24 }
 0x340   :  { %v417_v47 = vld [vmem:[#allocation2 + $0x32] sm:$0xff]  ;;  %v416_v48 = vld [vmem:[#allocation2 + $0x2a] sm:$0xff] }
 0x341   :  { %v413_v49 = vld [vmem:[#allocation2 + $0x30] sm:$0xff]  ;;  %442 = vrot.lane.b32.xlu1 %v416_v48, %s1123_s25 }
 0x342   :  { %428 = vrot.lane.b32.xlu2 %v413_v49, %s1122_s24  ;;  %444 = vrot.lane.b32.xlu0 %v417_v47, %s1123_s25  ;;  %v409_v13 = vld [vmem:[#allocation2 + $0x2e] sm:$0xff]  ;;  %v579_v49 = vld [vmem:[%s1672_s1 + $0x100] sm:$0xff] }
 0x383   :  { %v423_v60 = vpop.permute.xlu2 %422 }
 0x384   :  { %v450_v62 = vsel %vm12_vm1, %v406_v61, %v423_v60 }
 0x38c   :  { %v441_v4 = vpop.permute.xlu2 %440 }
 0x39c   :  { %v429_v11 = vpop.permute.xlu2 %428 }
 0x39d   :  { %v453_v14 = vsel %vm12_vm1, %v409_v13, %v429_v11 }
 0x3a3   :  { %v425_v1 = vpop.permute.xlu1 %424 }
 0x3a4   :  { %v439_v63 = vpop.permute.xlu0 %438  ;;  %v451_v3 = vsel %vm12_vm1, %v407_v2, %v425_v1 }
 0x3a5   :  { %v454_v0 = vsel %vm199_vm6, %v450_v62, %v439_v63  ;;  %v455_v5 = vsel %vm199_vm6, %v451_v3, %v441_v4 }
 0x3a6   :  { %1048 = vmatmul.msk.f32.vlgmr.msra.gmra.mxu3 %vm214_vm7, %v454_v0 }
 0x3ac   :  { %v427_v6 = vpop.permute.xlu0 %426 }
 0x3ad   :  { %v452_v8 = vsel %vm12_vm1, %v408_v7, %v427_v6  ;;  %v1088_v7 = vld [vmem:[%s1672_s1 + $0x138] ss:$0 sm:$0xff] }
 0x3ae   :  { %1049 = vmatmul.msk.f32.gmra.mxu3 %vm214_vm7, %v455_v5 }
 0x3b3   :  { %v443_v9 = vpop.permute.xlu1 %442 }
 0x3b4   :  { %v456_v10 = vsel %vm199_vm6, %v452_v8, %v443_v9  ;;  %v445_v12 = vpop.permute.xlu0 %444 }
 0x3b5   :  { %v457_v15 = vsel %vm199_vm6, %v453_v14, %v445_v12 }
 0x3b6   :  { %1050 = vmatmul.msk.f32.gmra.mxu3 %vm214_vm7, %v456_v10 }
 0x3be   :  { %1051 = vmatmul.msk.f32.gmra.mxu3 %vm214_vm7, %v457_v15  ;;  %v697_v15 = vld [vmem:[%s1672_s1 + $0x178] sm:$0xf] }
 0x3bf   :  { %1057 = vmatpush.msk.msrb.mxu1 %vm227_vm5, %v697_v15 }
 0x429   :  { %v500_v17 = vpop.f32.mrf.mxu3 }
 0x42a   :  { %v501_v18 = vadd.f32 %v1087_v16, %v500_v17 }
 0x42c   :  { %v512_v19 = vmax.f32 %v501_v18, 0.0 }
 0x42e   :  { %v1382_v20 = vadd.f32 %v512_v19, %v284_v32 }
 0x430   :  { %v520_v21 = vmax.f32 %v1382_v20, 0.0 }
 0x431   :  { %v503_v22 = vpop.f32.mrf.mxu3 }
 0x432   :  { %524 = vst.msk [vmem:[#allocation2 + $0x8] sm:$0xff] %vm12_vm1, %v520_v21  ;;  %v504_v23 = vadd.f32 %v1087_v16, %v503_v22 }
 0x434   :  { %v513_v26 = vmax.f32 %v504_v23, 0.0 }
 0x436   :  { %v1400_v32 = vadd.f32 %v513_v26, %v285_v40 }
 0x438   :  { %v521_v28 = vmax.f32 %v1400_v32, 0.0 }
 0x439   :  { %v506_v29 = vpop.f32.mrf.mxu3  ;;  %v532_v30 = vld [vmem:[#allocation2 + $0x8] sm:$0xff] }
 0x43a   :  { %525 = vst.msk [vmem:[#allocation2 + $0x10] sm:$0xff] %vm12_vm1, %v521_v28  ;;  %v507_v33 = vadd.f32 %v1087_v16, %v506_v29  ;;  %542 = vrot.lane.b32.xlu1 %v532_v30, %s1122_s24  ;;  %v528_v51 = vld [vmem:[#allocation2 + $0x4] sm:$0xff] }
 0x43c   :  { %v514_v37 = vmax.f32 %v507_v33, 0.0 }
 0x43e   :  { %v1412_v40 = vadd.f32 %v514_v37, %v286_v45  ;;  %v695_v37 = vld [vmem:[%s1672_s1 + $0x168] sm:$0xff] }
 0x440   :  { %v522_v34 = vmax.f32 %v1412_v40, 0.0 }
 0x441   :  { %v509_v35 = vpop.f32.mrf.mxu3  ;;  %v533_v36 = vld [vmem:[#allocation2 + $0x10] sm:$0xff] }
 0x442   :  { %v536_v38 = vld [vmem:[#allocation2 + $0x14] sm:$0xff]  ;;  %v529_v39 = vld [vmem:[#allocation2 + $0xc] sm:$0xff]  ;;  %526 = vst.msk [vmem:[#allocation2 + $0x28] sm:$0xff] %vm12_vm1, %v522_v34  ;;  %v510_v41 = vadd.f32 %v1087_v16, %v509_v35  ;;  %544 = vrot.lane.b32.xlu0 %v533_v36, %s1122_s24  ;;  %v694_v35 = vld [vmem:[%s1672_s1 + $0x160] sm:$0xff] }
 0x443   :  { %560 = vrot.lane.b32.xlu1 %v536_v38, %s1123_s25  ;;  %558 = vrot.lane.b32.xlu2 %v529_v39, %s1123_s25  ;;  %v696_v16 = vld [vmem:[%s1672_s1 + $0x170] sm:$0xff]  ;;  %v693_v36 = vld [vmem:[%s1672_s1 + $0x158] sm:$0xff] }
 0x444   :  { %v515_v44 = vmax.f32 %v510_v41, 0.0  ;;  %724 = vmatpush.msrb.mxu1 %v696_v16  ;;  %v692_v38 = vld [vmem:[%s1672_s1 + $0x150] sm:$0xff]  ;;  %v690_v41 = vld [vmem:[%s1672_s1 + $0x140] sm:$0xff] }
 0x446   :  { %v1423_v45 = vadd.f32 %v515_v44, %v287_v54  ;;  %v580_v54 = vld [vmem:[%s1672_s1 + $0x108] sm:$0xff]  ;;  %725 = vmatpush.msrb.mxu1 %v695_v37 }
 0x447   :  { %616 = vmatpush.msrb.mxu0 %v580_v54 }
 0x448   :  { %v523_v42 = vmax.f32 %v1423_v45, 0.0  ;;  %726 = vmatpush.msrb.mxu1 %v694_v35  ;;  %v813_v45 = vld [vmem:[%s1672_s1 + $0x1c0] sm:$0xf] }
 0x449   :  { %v534_v43 = vld [vmem:[#allocation2 + $0x28] sm:$0xff]  ;;  %617 = vmatpush.msrb.mxu0 %v579_v49  ;;  %1062 = vmatpush.msk.msrb.mxu2 %vm227_vm5, %v813_v45 }
 0x44a   :  { %527 = vst.msk [vmem:[#allocation2 + $0x30] sm:$0xff] %vm12_vm1, %v523_v42  ;;  %v530_v63 = vld [vmem:[#allocation2 + $0x24] sm:$0xff]  ;;  %727 = vmatpush.msrb.mxu1 %v693_v36 }
 0x44b   :  { %546 = vrot.lane.b32.xlu2 %v534_v43, %s1122_s24  ;;  %618 = vmatpush.msrb.mxu0 %v578_v50 }
 0x44c   :  { %728 = vmatpush.msrb.mxu1 %v692_v38 }
 0x451   :  { %v537_v46 = vld [vmem:[#allocation2 + $0x34] sm:$0xff]  ;;  %v531_v48 = vld [vmem:[#allocation2 + $0x2c] sm:$0xff] }
 0x452   :  { %v535_v47 = vld [vmem:[#allocation2 + $0x30] sm:$0xff]  ;;  %562 = vrot.lane.b32.xlu0 %v531_v48, %s1123_s25 }
 0x453   :  { %548 = vrot.lane.b32.xlu1 %v535_v47, %s1122_s24  ;;  %564 = vrot.lane.b32.xlu2 %v537_v46, %s1123_s25 }
 0x49d   :  { %v559_v55 = vpop.permute.xlu2 %558 }
 0x4a5   :  { %v547_v62 = vpop.permute.xlu2 %546 }
 0x4a6   :  { %v572_v0 = vsel %vm12_vm1, %v530_v63, %v547_v62  ;;  %v1089_v62 = vld [vmem:[%s1672_s1 + $0x180] ss:$0 sm:$0xff] }
 0x4ac   :  { %v543_v52 = vpop.permute.xlu1 %542 }
 0x4ad   :  { %v570_v56 = vsel %vm12_vm1, %v528_v51, %v543_v52  ;;  %v565_v5 = vpop.permute.xlu2 %564 }
 0x4ae   :  { %v574_v57 = vsel %vm199_vm6, %v570_v56, %v559_v55 }
 0x4af   :  { %1053 = vmatmul.msk.f32.vlgmr.msrb.gmra.mxu0 %vm214_vm7, %v574_v57 }
 0x4b4   :  { %v545_v58 = vpop.permute.xlu0 %544 }
 0x4b5   :  { %v561_v59 = vpop.permute.xlu1 %560  ;;  %v571_v60 = vsel %vm12_vm1, %v529_v39, %v545_v58  ;;  %v691_v39 = vld [vmem:[%s1672_s1 + $0x148] sm:$0xff] }
 0x4b6   :  { %v575_v61 = vsel %vm199_vm6, %v571_v60, %v561_v59  ;;  %729 = vmatpush.msrb.mxu1 %v691_v39 }
 0x4b7   :  { %1054 = vmatmul.msk.f32.gmra.mxu0 %vm214_vm7, %v575_v61 }
 0x4b8   :  { %730 = vmatpush.msrb.mxu1 %v690_v41  ;;  %v1582_v41 = vld [vmem:[#allocation2 + $0x20] sm:$0xff] }
 0x4c4   :  { %v563_v1 = vpop.permute.xlu0 %562 }
 0x4c5   :  { %v576_v2 = vsel %vm199_vm6, %v572_v0, %v563_v1  ;;  %v549_v3 = vpop.permute.xlu1 %548 }
 0x4c6   :  { %1055 = vmatmul.msk.f32.gmra.mxu0 %vm214_vm7, %v576_v2  ;;  %v573_v4 = vsel %vm12_vm1, %v531_v48, %v549_v3 }
 0x4c7   :  { %v577_v6 = vsel %vm199_vm6, %v573_v4, %v565_v5 }
 0x4ce   :  { %1056 = vmatmul.msk.f32.gmra.mxu0 %vm214_vm7, %v577_v6 }
 0x52c   :  { %v620_v8 = vpop.f32.mrf.mxu0 }
 0x52d   :  { %v621_v9 = vadd.f32 %v1088_v7, %v620_v8 }
 0x52f   :  { %v632_v10 = vmax.f32 %v621_v9, 0.0 }
 0x531   :  { %636 = vst.msk [vmem:[#allocation2 + $0x8] sm:$0xff] %vm12_vm1, %v632_v10 }
 0x534   :  { %v623_v11 = vpop.f32.mrf.mxu0 }
 0x535   :  { %v624_v12 = vadd.f32 %v1088_v7, %v623_v11 }
 0x537   :  { %v633_v13 = vmax.f32 %v624_v12, 0.0 }
 0x538   :  { %v644_v14 = vld [vmem:[#allocation2 + $0x8] sm:$0xff] }
 0x539   :  { %637 = vst.msk [vmem:[#allocation2 + $0x10] sm:$0xff] %vm12_vm1, %v633_v13  ;;  %654 = vrot.lane.b32.xlu0 %v644_v14, %s1122_s24  ;;  %v640_v43 = vld [vmem:[#allocation2 + $0x4] sm:$0xff]  ;;  %v1526_v13 = vld [vmem:[#allocation2 + $0x18] sm:$0xff] }
 0x540   :  { %v645_v17 = vld [vmem:[#allocation2 + $0x10] sm:$0xff] }
 0x541   :  { %v641_v18 = vld [vmem:[#allocation2 + $0xc] sm:$0xff]  ;;  %v648_v19 = vld [vmem:[#allocation2 + $0x14] sm:$0xff]  ;;  %656 = vrot.lane.b32.xlu2 %v645_v17, %s1122_s24 }
 0x542   :  { %670 = vrot.lane.b32.xlu1 %v641_v18, %s1123_s25  ;;  %672 = vrot.lane.b32.xlu0 %v648_v19, %s1123_s25  ;;  %v1542_v17 = vld [vmem:[#allocation2 + $0x38] sm:$0xff]  ;;  %v811_v19 = vld [vmem:[%s1672_s1 + $0x1b0] sm:$0xff] }
 0x543   :  { %v626_v22 = vpop.f32.mrf.mxu0 }
 0x544   :  { %v627_v23 = vadd.f32 %v1088_v7, %v626_v22  ;;  %v810_v22 = vld [vmem:[%s1672_s1 + $0x1a8] sm:$0xff] }
 0x546   :  { %v634_v24 = vmax.f32 %v627_v23, 0.0  ;;  %v809_v23 = vld [vmem:[%s1672_s1 + $0x1a0] sm:$0xff] }
 0x548   :  { %638 = vst.msk [vmem:[#allocation2 + $0x28] sm:$0xff] %vm12_vm1, %v634_v24  ;;  %v808_v24 = vld [vmem:[%s1672_s1 + $0x198] sm:$0xff] }
 0x54b   :  { %v629_v25 = vpop.f32.mrf.mxu0 }
 0x54c   :  { %v630_v26 = vadd.f32 %v1088_v7, %v629_v25  ;;  %v807_v25 = vld [vmem:[%s1672_s1 + $0x190] sm:$0xff] }
 0x54e   :  { %v635_v31 = vmax.f32 %v630_v26, 0.0  ;;  %v806_v26 = vld [vmem:[%s1672_s1 + $0x188] sm:$0xff] }
 0x54f   :  { %v646_v27 = vld [vmem:[#allocation2 + $0x28] sm:$0xff] }
 0x550   :  { %639 = vst.msk [vmem:[#allocation2 + $0x30] sm:$0xff] %vm12_vm1, %v635_v31  ;;  %658 = vrot.lane.b32.xlu1 %v646_v27, %s1122_s24  ;;  %v642_v52 = vld [vmem:[#allocation2 + $0x24] sm:$0xff] }
 0x551   :  { %v1573_v31 = vld [vmem:[#allocation2] sm:$0xff] }
 0x557   :  { %v649_v29 = vld [vmem:[#allocation2 + $0x34] sm:$0xff]  ;;  %v643_v33 = vld [vmem:[#allocation2 + $0x2c] sm:$0xff] }
 0x558   :  { %v647_v30 = vld [vmem:[#allocation2 + $0x30] sm:$0xff]  ;;  %676 = vrot.lane.b32.xlu1 %v649_v29, %s1123_s25  ;;  %674 = vrot.lane.b32.xlu2 %v643_v33, %s1123_s25 }
 0x559   :  { %660 = vrot.lane.b32.xlu0 %v647_v30, %s1122_s24 }
 0x59b   :  { %v657_v53 = vpop.permute.xlu2 %656 }
 0x59c   :  { %v683_v49 = vsel %vm12_vm1, %v641_v18, %v657_v53 }
 0x5ab   :  { %v655_v44 = vpop.permute.xlu0 %654 }
 0x5ac   :  { %v682_v46 = vsel %vm12_vm1, %v640_v43, %v655_v44 }
 0x5b2   :  { %v675_v55 = vpop.permute.xlu2 %674 }
 0x5b4   :  { %v671_v47 = vpop.permute.xlu1 %670  ;;  %v673_v54 = vpop.permute.xlu0 %672 }
 0x5b5   :  { %v686_v48 = vsel %vm199_vm6, %v682_v46, %v671_v47  ;;  %v687_v50 = vsel %vm199_vm6, %v683_v49, %v673_v54  ;;  %v1090_v49 = vld [vmem:[%s1672_s1 + $0x1c8] ss:$0 sm:$0xff] }
 0x5b6   :  { %1058 = vmatmul.msk.f32.vlgmr.msrb.gmra.mxu1 %vm214_vm7, %v686_v48 }
 0x5be   :  { %1059 = vmatmul.msk.f32.gmra.mxu1 %vm214_vm7, %v687_v50 }
 0x5c2   :  { %v659_v51 = vpop.permute.xlu1 %658 }
 0x5c3   :  { %v684_v56 = vsel %vm12_vm1, %v642_v52, %v659_v51 }
 0x5c4   :  { %v688_v57 = vsel %vm199_vm6, %v684_v56, %v675_v55  ;;  %v921_v55 = vld [vmem:[%s1672_s1 + $0x208] sm:$0xf]  ;;  %v920_v56 = vld [vmem:[%s1672_s1 + $0x200] sm:$0xff] }
 0x5c5   :  { %1067 = vmatpush.msk.msrb.mxu3 %vm227_vm5, %v921_v55 }
 0x5c6   :  { %1060 = vmatmul.msk.f32.gmra.mxu1 %vm214_vm7, %v688_v57 }
 0x5c7   :  { %948 = vmatpush.msrb.mxu3 %v920_v56 }
 0x5ca   :  { %v677_v58 = vpop.permute.xlu1 %676 }
 0x5cb   :  { %v661_v59 = vpop.permute.xlu0 %660 }
 0x5cc   :  { %v685_v60 = vsel %vm12_vm1, %v643_v33, %v661_v59 }
 0x5cd   :  { %v689_v61 = vsel %vm199_vm6, %v685_v60, %v677_v58 }
 0x5ce   :  { %1061 = vmatmul.msk.f32.gmra.mxu1 %vm214_vm7, %v689_v61 }
 0x633   :  { %v732_v63 = vpop.f32.mrf.mxu1 }
 0x634   :  { %v733_v0 = vadd.f32 %v1089_v62, %v732_v63 }
 0x636   :  { %v744_v1 = vmax.f32 %v733_v0, 0.0 }
 0x638   :  { %v748_v2 = vadd.f32 %v744_v1, %v520_v21 }
 0x63a   :  { %v752_v3 = vmax.f32 %v748_v2, 0.0 }
 0x63b   :  { %v735_v4 = vpop.f32.mrf.mxu1 }
 0x63c   :  { %756 = vst.msk [vmem:[#allocation2 + $0x8] sm:$0xff] %vm12_vm1, %v752_v3  ;;  %v736_v5 = vadd.f32 %v1089_v62, %v735_v4 }
 0x63e   :  { %v745_v6 = vmax.f32 %v736_v5, 0.0 }
 0x640   :  { %v1517_v7 = vadd.f32 %v745_v6, %v521_v28  ;;  %v919_v6 = vld [vmem:[%s1672_s1 + $0x1f8] sm:$0xff] }
 0x641   :  { %949 = vmatpush.msrb.mxu3 %v919_v6 }
 0x642   :  { %v753_v8 = vmax.f32 %v1517_v7, 0.0 }
 0x643   :  { %v738_v9 = vpop.f32.mrf.mxu1  ;;  %v761_v10 = vld [vmem:[#allocation2 + $0x8] sm:$0xff] }
 0x644   :  { %757 = vst.msk [vmem:[#allocation2 + $0x10] sm:$0xff] %vm12_vm1, %v753_v8  ;;  %v739_v20 = vadd.f32 %v1089_v62, %v738_v9  ;;  %772 = vrot.lane.b32.xlu2 %v761_v10, %s1122_s24  ;;  %v918_v9 = vld [vmem:[%s1672_s1 + $0x1f0] sm:$0xff] }
 0x645   :  { %950 = vmatpush.msrb.mxu3 %v918_v9 }
 0x646   :  { %v746_v21 = vmax.f32 %v739_v20, 0.0  ;;  %v916_v20 = vld [vmem:[%s1672_s1 + $0x1e0] sm:$0xff] }
 0x648   :  { %v750_v11 = vadd.f32 %v746_v21, %v522_v34  ;;  %v915_v21 = vld [vmem:[%s1672_s1 + $0x1d8] sm:$0xff] }
 0x64a   :  { %v754_v12 = vmax.f32 %v750_v11, 0.0  ;;  %v914_v11 = vld [vmem:[%s1672_s1 + $0x1d0] sm:$0xff] }
 0x64b   :  { %v741_v32 = vpop.f32.mrf.mxu1  ;;  %v764_v28 = vld [vmem:[#allocation2 + $0x10] sm:$0xff] }
 0x64c   :  { %758 = vst.msk [vmem:[#allocation2 + $0x28] sm:$0xff] %vm12_vm1, %v754_v12  ;;  %v742_v14 = vadd.f32 %v1089_v62, %v741_v32  ;;  %774 = vrot.lane.b32.xlu1 %v764_v28, %s1122_s24  ;;  %786 = vrot.lane.b32.xlu0 %v764_v28, %s1123_s25 }
 0x64d   :  { %788 = vrot.lane.b32.xlu2 %v1526_v13, %s1123_s25 }
 0x64e   :  { %v747_v15 = vmax.f32 %v742_v14, 0.0 }
 0x650   :  { %v1535_v40 = vadd.f32 %v747_v15, %v523_v42  ;;  %v812_v42 = vld [vmem:[%s1672_s1 + $0x1b8] sm:$0xff] }
 0x651   :  { %840 = vmatpush.msrb.mxu2 %v812_v42 }
 0x652   :  { %v755_v34 = vmax.f32 %v1535_v40, 0.0 }
 0x653   :  { %v763_v16 = vld [vmem:[#allocation2 + $0x28] sm:$0xff]  ;;  %841 = vmatpush.msrb.mxu2 %v811_v19 }
 0x654   :  { %759 = vst.msk [vmem:[#allocation2 + $0x30] sm:$0xff] %vm12_vm1, %v755_v34  ;;  %776 = vrot.lane.b32.xlu0 %v763_v16, %s1122_s24 }
 0x655   :  { %842 = vmatpush.msrb.mxu2 %v810_v22 }
 0x657   :  { %843 = vmatpush.msrb.mxu2 %v809_v23 }
 0x659   :  { %844 = vmatpush.msrb.mxu2 %v808_v24 }
 0x65b   :  { %v765_v18 = vld [vmem:[#allocation2 + $0x30] sm:$0xff]  ;;  %845 = vmatpush.msrb.mxu2 %v807_v25 }
 0x65c   :  { %792 = vrot.lane.b32.xlu0 %v1542_v17, %s1123_s25  ;;  %778 = vrot.lane.b32.xlu2 %v765_v18, %s1122_s24 }
 0x65d   :  { %790 = vrot.lane.b32.xlu1 %v765_v18, %s1123_s25  ;;  %846 = vmatpush.msrb.mxu2 %v806_v26  ;;  %v974_v26 = vld [vmem:[%s1672_s1 + $0x228] sm:$0xf] }
 0x65e   :  { %1072 = vmatpush.msk.msra.mxu0 %vm227_vm5, %v974_v26 }
 0x69e   :  { %v773_v27 = vpop.permute.xlu2 %772 }
 0x69f   :  { %v798_v29 = vsel %vm12_vm1, %v1573_v31, %v773_v27 }
 0x6a7   :  { %v789_v36 = vpop.permute.xlu2 %788 }
 0x6b6   :  { %v779_v47 = vpop.permute.xlu2 %778 }
 0x6b7   :  { %v801_v53 = vsel %vm12_vm1, %v763_v16, %v779_v47 }
 0x6be   :  { %v787_v30 = vpop.permute.xlu0 %786  ;;  %v775_v37 = vpop.permute.xlu1 %774 }
 0x6bf   :  { %v802_v33 = vsel %vm199_vm6, %v798_v29, %v787_v30  ;;  %v799_v35 = vsel %vm12_vm1, %v761_v10, %v775_v37  ;;  %v917_v10 = vld [vmem:[%s1672_s1 + $0x1e8] sm:$0xff]  ;;  %v972_v29 = vld [vmem:[%s1672_s1 + $0x218] sm:$0xff] }
 0x6c0   :  { %1063 = vmatmul.msk.f32.vlgmr.msrb.gmra.mxu2 %vm214_vm7, %v802_v33  ;;  %v803_v38 = vsel %vm199_vm6, %v799_v35, %v789_v36  ;;  %951 = vmatpush.msrb.mxu3 %v917_v10  ;;  %v1091_v33 = vld [vmem:[%s1672_s1 + $0x210] ss:$0 sm:$0xff] }
 0x6c2   :  { %952 = vmatpush.msrb.mxu3 %v916_v20 }
 0x6c4   :  { %953 = vmatpush.msrb.mxu3 %v915_v21 }
 0x6c6   :  { %v777_v39 = vpop.permute.xlu0 %776  ;;  %954 = vmatpush.msrb.mxu3 %v914_v11 }
 0x6c7   :  { %v800_v44 = vsel %vm12_vm1, %v1582_v41, %v777_v39 }
 0x6c8   :  { %1064 = vmatmul.msk.f32.gmra.mxu2 %vm214_vm7, %v803_v38 }
 0x6ce   :  { %v793_v48 = vpop.permute.xlu0 %792 }
 0x6cf   :  { %v791_v43 = vpop.permute.xlu1 %790  ;;  %v805_v54 = vsel %vm199_vm6, %v801_v53, %v793_v48 }
 0x6d0   :  { %v804_v46 = vsel %vm199_vm6, %v800_v44, %v791_v43 }
 0x6d1   :  { %1065 = vmatmul.msk.f32.gmra.mxu2 %vm214_vm7, %v804_v46 }
 0x6d9   :  { %1066 = vmatmul.msk.f32.gmra.mxu2 %vm214_vm7, %v805_v54 }
 0x743   :  { %v848_v50 = vpop.f32.mrf.mxu2 }
 0x744   :  { %v849_v51 = vadd.f32 %v1090_v49, %v848_v50 }
 0x746   :  { %v860_v52 = vmax.f32 %v849_v51, 0.0 }
 0x748   :  { %864 = vst.msk [vmem:[#allocation2 + $0x8] sm:$0xff] %vm12_vm1, %v860_v52 }
 0x74b   :  { %v851_v57 = vpop.f32.mrf.mxu2 }
 0x74c   :  { %v852_v58 = vadd.f32 %v1090_v49, %v851_v57 }
 0x74e   :  { %v861_v59 = vmax.f32 %v852_v58, 0.0 }
 0x74f   :  { %v869_v60 = vld [vmem:[#allocation2 + $0x8] sm:$0xff] }
 0x750   :  { %865 = vst.msk [vmem:[#allocation2 + $0x10] sm:$0xff] %vm12_vm1, %v861_v59  ;;  %880 = vrot.lane.b32.xlu1 %v869_v60, %s1122_s24 }
 0x754   :  { %v854_v61 = vpop.f32.mrf.mxu2 }
 0x755   :  { %v855_v62 = vadd.f32 %v1090_v49, %v854_v61 }
 0x757   :  { %v862_v63 = vmax.f32 %v855_v62, 0.0  ;;  %v872_v0 = vld [vmem:[#allocation2 + $0x10] sm:$0xff] }
 0x758   :  { %882 = vrot.lane.b32.xlu0 %v872_v0, %s1122_s24  ;;  %894 = vrot.lane.b32.xlu2 %v872_v0, %s1123_s25 }
 0x759   :  { %866 = vst.msk [vmem:[#allocation2 + $0x28] sm:$0xff] %vm12_vm1, %v862_v63  ;;  %896 = vrot.lane.b32.xlu1 %v1526_v13, %s1123_s25 }
 0x75c   :  { %v857_v1 = vpop.f32.mrf.mxu2 }
 0x75d   :  { %v858_v2 = vadd.f32 %v1090_v49, %v857_v1  ;;  %v1092_v49 = vld [vmem:[%s1672_s1 + $0x230] ss:$0 sm:$0xff] }
 0x75f   :  { %v863_v3 = vmax.f32 %v858_v2, 0.0 }
 0x760   :  { %v871_v4 = vld [vmem:[#allocation2 + $0x28] sm:$0xff] }
 0x761   :  { %867 = vst.msk [vmem:[#allocation2 + $0x30] sm:$0xff] %vm12_vm1, %v863_v3  ;;  %884 = vrot.lane.b32.xlu2 %v871_v4, %s1122_s24 }
 0x768   :  { %v873_v5 = vld [vmem:[#allocation2 + $0x30] sm:$0xff] }
 0x769   :  { %886 = vrot.lane.b32.xlu1 %v873_v5, %s1122_s24  ;;  %898 = vrot.lane.b32.xlu0 %v873_v5, %s1123_s25 }
 0x76a   :  { %900 = vrot.lane.b32.xlu2 %v1542_v17, %s1123_s25 }
 0x7b2   :  { %v895_v13 = vpop.permute.xlu2 %894 }
 0x7bb   :  { %v885_v18 = vpop.permute.xlu2 %884 }
 0x7bc   :  { %v908_v45 = vsel %vm12_vm1, %v1582_v41, %v885_v18 }
 0x7c2   :  { %v881_v12 = vpop.permute.xlu1 %880 }
 0x7c3   :  { %v906_v32 = vsel %vm12_vm1, %v1573_v31, %v881_v12  ;;  %v973_v31 = vld [vmem:[%s1672_s1 + $0x220] sm:$0xff] }
 0x7c4   :  { %v910_v28 = vsel %vm199_vm6, %v906_v32, %v895_v13  ;;  %v901_v24 = vpop.permute.xlu2 %900  ;;  %1002 = vmatpush.msra.mxu0 %v973_v31 }
 0x7c5   :  { %1068 = vmatmul.msk.f32.vlgmr.msrb.gmra.mxu3 %vm214_vm7, %v910_v28 }
 0x7c6   :  { %1003 = vmatpush.msra.mxu0 %v972_v29 }
 0x7ca   :  { %v883_v14 = vpop.permute.xlu0 %882 }
 0x7cb   :  { %v907_v15 = vsel %vm12_vm1, %v869_v60, %v883_v14  ;;  %v897_v16 = vpop.permute.xlu1 %896 }
 0x7cc   :  { %v911_v17 = vsel %vm199_vm6, %v907_v15, %v897_v16 }
 0x7cd   :  { %1069 = vmatmul.msk.f32.gmra.mxu3 %vm214_vm7, %v911_v17 }
 0x7db   :  { %v899_v42 = vpop.permute.xlu0 %898  ;;  %v887_v22 = vpop.permute.xlu1 %886 }
 0x7dc   :  { %v912_v19 = vsel %vm199_vm6, %v908_v45, %v899_v42  ;;  %v909_v23 = vsel %vm12_vm1, %v871_v4, %v887_v22 }
 0x7dd   :  { %1070 = vmatmul.msk.f32.gmra.mxu3 %vm214_vm7, %v912_v19  ;;  %v913_v25 = vsel %vm199_vm6, %v909_v23, %v901_v24 }
 0x7e5   :  { %1071 = vmatmul.msk.f32.gmra.mxu3 %vm214_vm7, %v913_v25 }
 0x848   :  { %v956_v27 = vpop.f32.mrf.mxu3 }
 0x850   :  { %v958_v30 = vpop.f32.mrf.mxu3 }
 0x851   :  { %v959_v35 = vadd.f32 %v1091_v33, %v958_v30 }
 0x853   :  { %v966_v36 = vmax.f32 %v959_v35, 0.0 }
 0x855   :  { %v968_v39 = vadd.f32 %v966_v36, %v753_v8 }
 0x857   :  { %v970_v43 = vmax.f32 %v968_v39, 0.0 }
 0x859   :  { %v979_v48 = vrot.slane %v970_v43, 7 }
 0x860   :  { %v961_v37 = vpop.f32.mrf.mxu3 }
 0x868   :  { %v963_v38 = vpop.f32.mrf.mxu3 }
 0x869   :  { %v964_v41 = vadd.f32 %v1091_v33, %v963_v38 }
 0x86b   :  { %v967_v44 = vmax.f32 %v964_v41, 0.0 }
 0x86d   :  { %v969_v46 = vadd.f32 %v967_v44, %v755_v34 }
 0x86f   :  { %v971_v47 = vmax.f32 %v969_v46, 0.0 }
 0x871   :  { %v980_v53 = vrot.slane %v971_v47, 6 }
 0x873   :  { %v982_v54 = vsel %vm981_vm8, %v980_v53, %v979_v48 }
 0x874   :  { %1073 = vmatmul.msk.f32.vlgmr.msra.gmra.mxu0 %vm12_vm1, %v982_v54 }
 0x8f1   :  { %v1005_v7 = vpop.f32.mrf.mxu0 }
 0x8f2   :  { %v1006_v8 = vadd.f32 %v1092_v49, %v1005_v7 }
 0x8f4   :  { %v1009_v40 = vrot.slane %v1006_v8, 1  ;;  %1012 = vst.msk [vmem:[#allocation3] sm:$0x1] %vm1011_vm9, %v1006_v8 }
 0x8f6   :  { %1013 = vst.msk [vmem:[#allocation3 + $0x1] sm:$0x1] %vm1011_vm9, %v1009_v40 }
 0x8f7   :  { %1026 = dma.vmem_to_hbm [thread:$0]  %s1019_s27, 32, %s1021_s30, [#allocation4], %s1126_s3, %s1126_s3, %s1127_s4  }
 0x8f8   :  { %1117 = dma.done.wait [#allocation4], 32  }
 0x8f9   :  { %1118 = vsyncadd [#allocation4], 4294967264 }
 0x8fa   :  { %1031 = vsyncpa [#allocation4], 1 }

</bundles_post_ra>
